<compile_context>
chip_gen: v5e
topology: v5e:2x2
jax: 0.10.0
libtpu: 0.0.40
codegen_flags: <defaults>
</compile_context>

<pallas_src>
import functools

import jax
import jax.numpy as jnp
from jax.experimental import pallas as pl
from jax.experimental.pallas import tpu as pltpu


# ---------------------------------------------------------------------------
# Fused kernel.  Grid = (time blocks,) ["arbitrary"], each grid step handles
# TT timesteps for the whole (padded) batch:
#   (1) gates = relu(x @ W1 + b1) @ [W_ir|W_iz|W_in] + fused bias   (big matmuls)
#   (2) TT sequential GRU steps, one fused (Hp,3Hp) matmul each, h in VMEM
#   (3) out = h_seq @ W_fc + b_fc                                    (big matmul)
# ---------------------------------------------------------------------------
def _decoder_kernel(x_ref, w1_ref, b1_ref, wi_ref, bi_ref, whh_ref, bhn_ref,
                    wfc_ref, bfc_ref, out_ref,
                    h_scratch, gates_scratch, hseq_scratch, *, tt, bp, hp):
    f32 = jnp.float32

    # h_0 = zeros at the start of the sequence.
    @pl.when(pl.program_id(0) == 0)
    def _():
        h_scratch[...] = jnp.zeros_like(h_scratch)

    # (1) Input path for all TT timesteps of this block at once (MXU-friendly).
    pre = jnp.maximum(
        jnp.dot(x_ref[...], w1_ref[...], preferred_element_type=f32) + b1_ref[...],
        0.0)
    gates_scratch[...] = (
        jnp.dot(pre, wi_ref[...], preferred_element_type=f32) + bi_ref[...])

    whh = whh_ref[...]          # (Hp, 3Hp) -- hoisted out of the step loop
    bhn = bhn_ref[...]          # (1, Hp)   -- only hidden bias not foldable

    # (2) Sequential GRU recurrence: one fused matmul per timestep.
    def step(s, h):
        row = pl.multiple_of(s * bp, 8)
        g = gates_scratch[pl.ds(row, bp), :]                      # (Bp, 3Hp)
        hh = jnp.dot(h, whh, preferred_element_type=f32)          # (Bp, 3Hp)
        r = jax.nn.sigmoid(g[:, :hp] + hh[:, :hp])
        z = jax.nn.sigmoid(g[:, hp:2 * hp] + hh[:, hp:2 * hp])
        n = jnp.tanh(g[:, 2 * hp:] + r * (hh[:, 2 * hp:] + bhn))
        h_new = n + z * (h - n)                 # == (1-z)*n + z*h, one op fewer
        hseq_scratch[pl.ds(row, bp), :] = h_new
        return h_new

    h = jax.lax.fori_loop(0, tt, step, h_scratch[...], unroll=True)
    h_scratch[...] = h

    # (3) Output projection for all TT timesteps at once (lane-dense width Op).
    out_ref[...] = (
        jnp.dot(hseq_scratch[...], wfc_ref[...], preferred_element_type=f32)
        + bfc_ref[...]
    ).astype(out_ref.dtype)


def _round_up(x, m):
    return (x + m - 1) // m * m


def _pad_to(a, shape):
    return jnp.pad(a, [(0, s - d) for s, d in zip(shape, a.shape)])


@jax.jit
def rnn_neural_decoder_forward(x_btf, params):
    """x_btf: (B, T, input_size) float32 (PyTorch batch_first layout)."""
    B, T, I = x_btf.shape
    H = params["w1"].shape[1]
    O = params["wfc"].shape[1]

    LANE, SUB = 128, 8
    Hp = _round_up(H, LANE)
    Op = _round_up(O, LANE)
    Bp = _round_up(B, SUB)

    # Timesteps per grid iteration: amortize per-grid-step overhead but keep the
    # per-block row count (and hence the gate/hseq scratches) VMEM-safe.
    TT = max(1, min(32, T, 2048 // Bp))
    Tp = _round_up(T, TT)
    RB = TT * Bp               # rows per grid step (time-major)
    N = Tp * Bp

    # ---- pad / fuse parameters (traced once under jit; trivially cheap) ----
    w1p = _pad_to(params["w1"], (I, Hp))
    b1p = _pad_to(params["b1"], (1, Hp))
    # Gate layout [r | z | n], each gate padded to width Hp so in-kernel lane
    # slices land on 128-aligned boundaries.  b_hr / b_hz are folded into the
    # fused input bias; only b_hn must stay inside the recurrence.
    wi_f = jnp.concatenate(
        [_pad_to(params[k], (Hp, Hp)) for k in ("wir", "wiz", "win")], axis=1)
    bi_f = jnp.concatenate(
        [_pad_to(params["bir"] + params["bhr"], (1, Hp)),
         _pad_to(params["biz"] + params["bhz"], (1, Hp)),
         _pad_to(params["bin"], (1, Hp))], axis=1)
    whh_f = jnp.concatenate(
        [_pad_to(params[k], (Hp, Hp)) for k in ("whr", "whz", "whn")], axis=1)
    bhn_p = _pad_to(params["bhn"], (1, Hp))
    wfcp = _pad_to(params["wfc"], (Hp, Op))
    bfcp = _pad_to(params["bfc"], (1, Op))

    # ---- wrapper glue: time-major, padded, flattened input ----
    x_tbf = jnp.transpose(x_btf, (1, 0, 2))                    # (T, B, I)
    x_tbf = jnp.pad(x_tbf, ((0, Tp - T), (0, Bp - B), (0, 0)))
    x2d = x_tbf.reshape(N, I)

    full = lambda t: (0, 0)

    out2d = pl.pallas_call(
        functools.partial(_decoder_kernel, tt=TT, bp=Bp, hp=Hp),
        out_shape=jax.ShapeDtypeStruct((N, Op), jnp.float32),
        grid_spec=pltpu.PrefetchScalarGridSpec(
            num_scalar_prefetch=0,
            grid=(Tp // TT,),
            in_specs=[
                pl.BlockSpec((RB, I), lambda t: (t, 0)),        # x (time-major)
                pl.BlockSpec((I, Hp), full),                    # W1
                pl.BlockSpec((1, Hp), full),                    # b1
                pl.BlockSpec((Hp, 3 * Hp), full),               # [Wir|Wiz|Win]
                pl.BlockSpec((1, 3 * Hp), full),                # fused input bias
                pl.BlockSpec((Hp, 3 * Hp), full),               # [Whr|Whz|Whn]
                pl.BlockSpec((1, Hp), full),                    # b_hn
                pl.BlockSpec((Hp, Op), full),                   # W_fc
                pl.BlockSpec((1, Op), full),                    # b_fc
            ],
            out_specs=pl.BlockSpec((RB, Op), lambda t: (t, 0)),
            scratch_shapes=[
                pltpu.VMEM((Bp, Hp), jnp.float32),              # h carry
                pltpu.VMEM((RB, 3 * Hp), jnp.float32),          # gate pre-acts
                pltpu.VMEM((RB, Hp), jnp.float32),              # h sequence
            ],
        ),
        compiler_params=pltpu.CompilerParams(
            dimension_semantics=("arbitrary",),
            vmem_limit_bytes=64 * 1024 * 1024),
    )(x2d, w1p, b1p, wi_f, bi_f, whh_f, bhn_p, wfcp, bfcp)

    out_tbo = out2d.reshape(Tp, Bp, Op)[:T, :B, :O]
    return jnp.transpose(out_tbo, (1, 0, 2))                   # (B, T, O)


def init_params(key, input_size, hidden_size, output_size):
    """Deterministic synthetic parameters (same shapes as the PyTorch module)."""
    ks = jax.random.split(key, 10)
    scale = 0.2
    H, I, O = hidden_size, input_size, output_size

    # Linear(input_size, hidden_size): PyTorch weight (H, I) -> stored (I, H)
    w1 = scale * jax.random.normal(ks[0], (I, H), jnp.float32)
    b1 = scale * jax.random.normal(ks[1], (1, H), jnp.float32)

    # GRU weight_ih_l0 (3H, H) split into r/z/n chunks, stored transposed (H, H)
    w_ih = scale * jax.random.normal(ks[2], (3 * H, H), jnp.float32)
    w_hh = scale * jax.random.normal(ks[3], (3 * H, H), jnp.float32)
    b_ih = scale * jax.random.normal(ks[4], (3 * H,), jnp.float32)
    b_hh = scale * jax.random.normal(ks[5], (3 * H,), jnp.float32)

    wir, wiz, win = (w_ih[i * H:(i + 1) * H].T for i in range(3))
    whr, whz, whn = (w_hh[i * H:(i + 1) * H].T for i in range(3))
    bir, biz, bin_ = (b_ih[i * H:(i + 1) * H][None, :] for i in range(3))
    bhr, bhz, bhn = (b_hh[i * H:(i + 1) * H][None, :] for i in range(3))

    # Linear(hidden_size, output_size)
    wfc = scale * jax.random.normal(ks[6], (H, O), jnp.float32)
    bfc = scale * jax.random.normal(ks[7], (1, O), jnp.float32)

    return dict(
        w1=w1, b1=b1,
        wir=wir, wiz=wiz, win=win,
        whr=whr, whz=whz, whn=whn,
        bir=bir, biz=biz, bin=bin_,
        bhr=bhr, bhz=bhz, bhn=bhn,
        wfc=wfc, bfc=bfc,
    )


def reference_forward(x_btf, p):
    """Pure-JAX reference matching nn.Linear/ReLU/GRU/Linear semantics."""
    pre = jnp.maximum(jnp.einsum("bti,ih->bth", x_btf, p["w1"]) + p["b1"][0], 0.0)
    B, T, H = pre.shape

    def step(h, x_t):
        r = jax.nn.sigmoid(x_t @ p["wir"] + p["bir"][0] + h @ p["whr"] + p["bhr"][0])
        z = jax.nn.sigmoid(x_t @ p["wiz"] + p["biz"][0] + h @ p["whz"] + p["bhz"][0])
        n = jnp.tanh(x_t @ p["win"] + p["bin"][0] + r * (h @ p["whn"] + p["bhn"][0]))
        h_new = (1.0 - z) * n + z * h
        return h_new, h_new

    h0 = jnp.zeros((B, H), jnp.float32)
    _, hs = jax.lax.scan(step, h0, jnp.transpose(pre, (1, 0, 2)))  # (T, B, H)
    out = jnp.einsum("tbh,ho->tbo", hs, p["wfc"]) + p["bfc"][0]
    return jnp.transpose(out, (1, 0, 2))


if __name__ == "__main__":
    # hidden_size = 6 + 2 from the module; small synthetic sizes for the rest.
    input_size, hidden_size, output_size = 16, 8, 4
    batch, seq = 2, 8

    key = jax.random.PRNGKey(0)
    k_x, k_p = jax.random.split(key)
    x = jax.random.normal(k_x, (batch, seq, input_size), jnp.float32)
    params = init_params(k_p, input_size, hidden_size, output_size)

    out = rnn_neural_decoder_forward(x, params)
    out = jax.block_until_ready(out)

    ref = reference_forward(x, params)
    assert out.shape == (batch, seq, output_size)
    assert jnp.allclose(out, ref, atol=1e-5, rtol=1e-5), "mismatch vs JAX reference"

    print("KERNEL_OK")
</pallas_src>

<mosaic_0001>
module attributes {stable_mosaic.version = 11 : i64} {
  func.func @_decoder_kernel(%arg0: i32, %arg1: memref<64x16xf32, #tpu.memory_space<vmem>>, %arg2: memref<16x128xf32, #tpu.memory_space<vmem>>, %arg3: memref<1x128xf32, #tpu.memory_space<vmem>>, %arg4: memref<128x384xf32, #tpu.memory_space<vmem>>, %arg5: memref<1x384xf32, #tpu.memory_space<vmem>>, %arg6: memref<128x384xf32, #tpu.memory_space<vmem>>, %arg7: memref<1x128xf32, #tpu.memory_space<vmem>>, %arg8: memref<128x128xf32, #tpu.memory_space<vmem>>, %arg9: memref<1x128xf32, #tpu.memory_space<vmem>>, %arg10: memref<64x128xf32, #tpu.memory_space<vmem>>, %arg11: memref<8x128xf32, #tpu.memory_space<vmem>>, %arg12: memref<64x384xf32, #tpu.memory_space<vmem>>, %arg13: memref<64x128xf32, #tpu.memory_space<vmem>>) attributes {dimension_semantics = [#tpu.dimension_semantics<arbitrary>], iteration_bounds = array<i64: 1>, scalar_prefetch = 0 : i64, scratch_operands = 3 : i64, tpu.core_type = #tpu.core_type<tc>, window_params = [{transform_indices = @transform_0, window_bounds = array<i64: 64, 16>}, {pipeline_mode = #tpu.pipeline_mode<synchronous>, transform_indices = @transform_1, window_bounds = array<i64: 16, 128>}, {pipeline_mode = #tpu.pipeline_mode<synchronous>, transform_indices = @transform_2, window_bounds = array<i64: 1, 128>}, {pipeline_mode = #tpu.pipeline_mode<synchronous>, transform_indices = @transform_3, window_bounds = array<i64: 128, 384>}, {pipeline_mode = #tpu.pipeline_mode<synchronous>, transform_indices = @transform_4, window_bounds = array<i64: 1, 384>}, {pipeline_mode = #tpu.pipeline_mode<synchronous>, transform_indices = @transform_5, window_bounds = array<i64: 128, 384>}, {pipeline_mode = #tpu.pipeline_mode<synchronous>, transform_indices = @transform_6, window_bounds = array<i64: 1, 128>}, {pipeline_mode = #tpu.pipeline_mode<synchronous>, transform_indices = @transform_7, window_bounds = array<i64: 128, 128>}, {pipeline_mode = #tpu.pipeline_mode<synchronous>, transform_indices = @transform_8, window_bounds = array<i64: 1, 128>}, {transform_indices = @transform_9, window_bounds = array<i64: 64, 128>}]} {
    %c0_i32 = arith.constant 0 : i32
    %0 = arith.cmpi eq, %arg0, %c0_i32 : i32
    %1 = arith.extui %0 : i1 to i32
    %c0_i32_0 = arith.constant 0 : i32
    %2 = arith.cmpi ne, %1, %c0_i32_0 : i32
    scf.if %2 {
      %cst_80 = arith.constant 0.000000e+00 : f32
      %292 = vector.broadcast %cst_80 : f32 to vector<8x128xf32>
      %c0_81 = arith.constant 0 : index
      %c0_82 = arith.constant 0 : index
      %293 = vector.load %arg11[%c0_81, %c0_82] : memref<8x128xf32, #tpu.memory_space<vmem>>, vector<8x128xf32>
      tpu.vector_store %arg11[%c0_81, %c0_82], %292 {strides = array<i32>} : memref<8x128xf32, #tpu.memory_space<vmem>>, vector<8x128xf32>,
    } else {
    }
    %c0 = arith.constant 0 : index
    %c0_1 = arith.constant 0 : index
    %3 = vector.load %arg1[%c0, %c0_1] : memref<64x16xf32, #tpu.memory_space<vmem>>, vector<64x16xf32>
    %c0_2 = arith.constant 0 : index
    %c0_3 = arith.constant 0 : index
    %4 = vector.load %arg2[%c0_2, %c0_3] : memref<16x128xf32, #tpu.memory_space<vmem>>, vector<16x128xf32>
    %cst = arith.constant dense<0.000000e+00> : vector<64x128xf32>
    %5 = tpu.matmul %3, %4, %cst {dimension_numbers = #tpu.dot_dimension_numbers<[1], [0], [0], [1], [0, 0, 1, 1], [], []>} : vector<64x16xf32>, vector<16x128xf32>, vector<64x128xf32> -> vector<64x128xf32>
    %c0_4 = arith.constant 0 : index
    %c0_5 = arith.constant 0 : index
    %6 = vector.load %arg3[%c0_4, %c0_5] : memref<1x128xf32, #tpu.memory_space<vmem>>, vector<1x128xf32>
    %7 = vector.broadcast %6 : vector<1x128xf32> to vector<64x128xf32>
    %8 = arith.addf %5, %7 : vector<64x128xf32>
    %cst_6 = arith.constant 0.000000e+00 : f32
    %9 = vector.broadcast %cst_6 : f32 to vector<64x128xf32>
    %10 = arith.maximumf %8, %9 : vector<64x128xf32>
    %c0_7 = arith.constant 0 : index
    %c0_8 = arith.constant 0 : index
    %11 = vector.load %arg4[%c0_7, %c0_8] : memref<128x384xf32, #tpu.memory_space<vmem>>, vector<128x384xf32>
    %cst_9 = arith.constant dense<0.000000e+00> : vector<64x384xf32>
    %12 = tpu.matmul %10, %11, %cst_9 {dimension_numbers = #tpu.dot_dimension_numbers<[1], [0], [0], [1], [0, 0, 1, 1], [], []>} : vector<64x128xf32>, vector<128x384xf32>, vector<64x384xf32> -> vector<64x384xf32>
    %c0_10 = arith.constant 0 : index
    %c0_11 = arith.constant 0 : index
    %13 = vector.load %arg5[%c0_10, %c0_11] : memref<1x384xf32, #tpu.memory_space<vmem>>, vector<1x384xf32>
    %14 = vector.broadcast %13 : vector<1x384xf32> to vector<64x384xf32>
    %15 = arith.addf %12, %14 : vector<64x384xf32>
    %c0_12 = arith.constant 0 : index
    %c0_13 = arith.constant 0 : index
    %16 = vector.load %arg12[%c0_12, %c0_13] : memref<64x384xf32, #tpu.memory_space<vmem>>, vector<64x384xf32>
    tpu.vector_store %arg12[%c0_12, %c0_13], %15 {strides = array<i32>} : memref<64x384xf32, #tpu.memory_space<vmem>>, vector<64x384xf32>,
    %c0_14 = arith.constant 0 : index
    %c0_15 = arith.constant 0 : index
    %17 = vector.load %arg6[%c0_14, %c0_15] : memref<128x384xf32, #tpu.memory_space<vmem>>, vector<128x384xf32>
    %c0_16 = arith.constant 0 : index
    %c0_17 = arith.constant 0 : index
    %18 = vector.load %arg7[%c0_16, %c0_17] : memref<1x128xf32, #tpu.memory_space<vmem>>, vector<1x128xf32>
    %c0_18 = arith.constant 0 : index
    %c0_19 = arith.constant 0 : index
    %19 = vector.load %arg11[%c0_18, %c0_19] : memref<8x128xf32, #tpu.memory_space<vmem>>, vector<8x128xf32>
    %c0_i32_20 = arith.constant 0 : i32
    %c8_i32 = arith.constant 8 : i32
    %20 = arith.muli %c0_i32_20, %c8_i32 : i32
    %21 = tpu.assume_multiple %20, 8 : i32
    %22 = arith.index_cast %21 : i32 to index
    %c0_21 = arith.constant 0 : index
    %23 = vector.load %arg12[%22, %c0_21] : memref<64x384xf32, #tpu.memory_space<vmem>>, vector<8x384xf32>
    %cst_22 = arith.constant dense<0.000000e+00> : vector<8x384xf32>
    %24 = tpu.matmul %19, %17, %cst_22 {dimension_numbers = #tpu.dot_dimension_numbers<[1], [0], [0], [1], [0, 0, 1, 1], [], []>} : vector<8x128xf32>, vector<128x384xf32>, vector<8x384xf32> -> vector<8x384xf32>
    %25 = vector.extract_strided_slice %23 {offsets = [0, 0], sizes = [8, 128], strides = [1, 1]} : vector<8x384xf32> to vector<8x128xf32>
    %26 = vector.extract_strided_slice %24 {offsets = [0, 0], sizes = [8, 128], strides = [1, 1]} : vector<8x384xf32> to vector<8x128xf32>
    %27 = arith.addf %25, %26 : vector<8x128xf32>
    %28 = arith.negf %27 : vector<8x128xf32>
    %29 = math.exp %28 : vector<8x128xf32>
    %cst_23 = arith.constant 1.000000e+00 : f32
    %30 = vector.broadcast %cst_23 : f32 to vector<8x128xf32>
    %31 = arith.addf %30, %29 : vector<8x128xf32>
    %32 = arith.divf %30, %31 : vector<8x128xf32>
    %33 = vector.extract_strided_slice %23 {offsets = [0, 128], sizes = [8, 128], strides = [1, 1]} : vector<8x384xf32> to vector<8x128xf32>
    %34 = vector.extract_strided_slice %24 {offsets = [0, 128], sizes = [8, 128], strides = [1, 1]} : vector<8x384xf32> to vector<8x128xf32>
    %35 = arith.addf %33, %34 : vector<8x128xf32>
    %36 = arith.negf %35 : vector<8x128xf32>
    %37 = math.exp %36 : vector<8x128xf32>
    %cst_24 = arith.constant 1.000000e+00 : f32
    %38 = vector.broadcast %cst_24 : f32 to vector<8x128xf32>
    %39 = arith.addf %38, %37 : vector<8x128xf32>
    %40 = arith.divf %38, %39 : vector<8x128xf32>
    %41 = vector.extract_strided_slice %23 {offsets = [0, 256], sizes = [8, 128], strides = [1, 1]} : vector<8x384xf32> to vector<8x128xf32>
    %42 = vector.extract_strided_slice %24 {offsets = [0, 256], sizes = [8, 128], strides = [1, 1]} : vector<8x384xf32> to vector<8x128xf32>
    %43 = vector.broadcast %18 : vector<1x128xf32> to vector<8x128xf32>
    %44 = arith.addf %42, %43 : vector<8x128xf32>
    %45 = arith.mulf %32, %44 : vector<8x128xf32>
    %46 = arith.addf %41, %45 : vector<8x128xf32>
    %47 = math.tanh %46 : vector<8x128xf32>
    %48 = arith.subf %19, %47 : vector<8x128xf32>
    %49 = arith.mulf %40, %48 : vector<8x128xf32>
    %50 = arith.addf %47, %49 : vector<8x128xf32>
    %51 = arith.index_cast %21 : i32 to index
    %c0_25 = arith.constant 0 : index
    %52 = vector.load %arg13[%51, %c0_25] : memref<64x128xf32, #tpu.memory_space<vmem>>, vector<8x128xf32>
    tpu.vector_store %arg13[%51, %c0_25], %50 {strides = array<i32>} : memref<64x128xf32, #tpu.memory_space<vmem>>, vector<8x128xf32>,
    %c1_i32 = arith.constant 1 : i32
    %c8_i32_26 = arith.constant 8 : i32
    %53 = arith.muli %c1_i32, %c8_i32_26 : i32
    %54 = tpu.assume_multiple %53, 8 : i32
    %55 = arith.index_cast %54 : i32 to index
    %c0_27 = arith.constant 0 : index
    %56 = vector.load %arg12[%55, %c0_27] : memref<64x384xf32, #tpu.memory_space<vmem>>, vector<8x384xf32>
    %cst_28 = arith.constant dense<0.000000e+00> : vector<8x384xf32>
    %57 = tpu.matmul %50, %17, %cst_28 {dimension_numbers = #tpu.dot_dimension_numbers<[1], [0], [0], [1], [0, 0, 1, 1], [], []>} : vector<8x128xf32>, vector<128x384xf32>, vector<8x384xf32> -> vector<8x384xf32>
    %58 = vector.extract_strided_slice %56 {offsets = [0, 0], sizes = [8, 128], strides = [1, 1]} : vector<8x384xf32> to vector<8x128xf32>
    %59 = vector.extract_strided_slice %57 {offsets = [0, 0], sizes = [8, 128], strides = [1, 1]} : vector<8x384xf32> to vector<8x128xf32>
    %60 = arith.addf %58, %59 : vector<8x128xf32>
    %61 = arith.negf %60 : vector<8x128xf32>
    %62 = math.exp %61 : vector<8x128xf32>
    %cst_29 = arith.constant 1.000000e+00 : f32
    %63 = vector.broadcast %cst_29 : f32 to vector<8x128xf32>
    %64 = arith.addf %63, %62 : vector<8x128xf32>
    %65 = arith.divf %63, %64 : vector<8x128xf32>
    %66 = vector.extract_strided_slice %56 {offsets = [0, 128], sizes = [8, 128], strides = [1, 1]} : vector<8x384xf32> to vector<8x128xf32>
    %67 = vector.extract_strided_slice %57 {offsets = [0, 128], sizes = [8, 128], strides = [1, 1]} : vector<8x384xf32> to vector<8x128xf32>
    %68 = arith.addf %66, %67 : vector<8x128xf32>
    %69 = arith.negf %68 : vector<8x128xf32>
    %70 = math.exp %69 : vector<8x128xf32>
    %cst_30 = arith.constant 1.000000e+00 : f32
    %71 = vector.broadcast %cst_30 : f32 to vector<8x128xf32>
    %72 = arith.addf %71, %70 : vector<8x128xf32>
    %73 = arith.divf %71, %72 : vector<8x128xf32>
    %74 = vector.extract_strided_slice %56 {offsets = [0, 256], sizes = [8, 128], strides = [1, 1]} : vector<8x384xf32> to vector<8x128xf32>
    %75 = vector.extract_strided_slice %57 {offsets = [0, 256], sizes = [8, 128], strides = [1, 1]} : vector<8x384xf32> to vector<8x128xf32>
    %76 = vector.broadcast %18 : vector<1x128xf32> to vector<8x128xf32>
    %77 = arith.addf %75, %76 : vector<8x128xf32>
    %78 = arith.mulf %65, %77 : vector<8x128xf32>
    %79 = arith.addf %74, %78 : vector<8x128xf32>
    %80 = math.tanh %79 : vector<8x128xf32>
    %81 = arith.subf %50, %80 : vector<8x128xf32>
    %82 = arith.mulf %73, %81 : vector<8x128xf32>
    %83 = arith.addf %80, %82 : vector<8x128xf32>
    %84 = arith.index_cast %54 : i32 to index
    %c0_31 = arith.constant 0 : index
    %85 = vector.load %arg13[%84, %c0_31] : memref<64x128xf32, #tpu.memory_space<vmem>>, vector<8x128xf32>
    tpu.vector_store %arg13[%84, %c0_31], %83 {strides = array<i32>} : memref<64x128xf32, #tpu.memory_space<vmem>>, vector<8x128xf32>,
    %c2_i32 = arith.constant 2 : i32
    %c8_i32_32 = arith.constant 8 : i32
    %86 = arith.muli %c2_i32, %c8_i32_32 : i32
    %87 = tpu.assume_multiple %86, 8 : i32
    %88 = arith.index_cast %87 : i32 to index
    %c0_33 = arith.constant 0 : index
    %89 = vector.load %arg12[%88, %c0_33] : memref<64x384xf32, #tpu.memory_space<vmem>>, vector<8x384xf32>
    %cst_34 = arith.constant dense<0.000000e+00> : vector<8x384xf32>
    %90 = tpu.matmul %83, %17, %cst_34 {dimension_numbers = #tpu.dot_dimension_numbers<[1], [0], [0], [1], [0, 0, 1, 1], [], []>} : vector<8x128xf32>, vector<128x384xf32>, vector<8x384xf32> -> vector<8x384xf32>
    %91 = vector.extract_strided_slice %89 {offsets = [0, 0], sizes = [8, 128], strides = [1, 1]} : vector<8x384xf32> to vector<8x128xf32>
    %92 = vector.extract_strided_slice %90 {offsets = [0, 0], sizes = [8, 128], strides = [1, 1]} : vector<8x384xf32> to vector<8x128xf32>
    %93 = arith.addf %91, %92 : vector<8x128xf32>
    %94 = arith.negf %93 : vector<8x128xf32>
    %95 = math.exp %94 : vector<8x128xf32>
    %cst_35 = arith.constant 1.000000e+00 : f32
    %96 = vector.broadcast %cst_35 : f32 to vector<8x128xf32>
    %97 = arith.addf %96, %95 : vector<8x128xf32>
    %98 = arith.divf %96, %97 : vector<8x128xf32>
    %99 = vector.extract_strided_slice %89 {offsets = [0, 128], sizes = [8, 128], strides = [1, 1]} : vector<8x384xf32> to vector<8x128xf32>
    %100 = vector.extract_strided_slice %90 {offsets = [0, 128], sizes = [8, 128], strides = [1, 1]} : vector<8x384xf32> to vector<8x128xf32>
    %101 = arith.addf %99, %100 : vector<8x128xf32>
    %102 = arith.negf %101 : vector<8x128xf32>
    %103 = math.exp %102 : vector<8x128xf32>
    %cst_36 = arith.constant 1.000000e+00 : f32
    %104 = vector.broadcast %cst_36 : f32 to vector<8x128xf32>
    %105 = arith.addf %104, %103 : vector<8x128xf32>
    %106 = arith.divf %104, %105 : vector<8x128xf32>
    %107 = vector.extract_strided_slice %89 {offsets = [0, 256], sizes = [8, 128], strides = [1, 1]} : vector<8x384xf32> to vector<8x128xf32>
    %108 = vector.extract_strided_slice %90 {offsets = [0, 256], sizes = [8, 128], strides = [1, 1]} : vector<8x384xf32> to vector<8x128xf32>
    %109 = vector.broadcast %18 : vector<1x128xf32> to vector<8x128xf32>
    %110 = arith.addf %108, %109 : vector<8x128xf32>
    %111 = arith.mulf %98, %110 : vector<8x128xf32>
    %112 = arith.addf %107, %111 : vector<8x128xf32>
    %113 = math.tanh %112 : vector<8x128xf32>
    %114 = arith.subf %83, %113 : vector<8x128xf32>
    %115 = arith.mulf %106, %114 : vector<8x128xf32>
    %116 = arith.addf %113, %115 : vector<8x128xf32>
    %117 = arith.index_cast %87 : i32 to index
    %c0_37 = arith.constant 0 : index
    %118 = vector.load %arg13[%117, %c0_37] : memref<64x128xf32, #tpu.memory_space<vmem>>, vector<8x128xf32>
    tpu.vector_store %arg13[%117, %c0_37], %116 {strides = array<i32>} : memref<64x128xf32, #tpu.memory_space<vmem>>, vector<8x128xf32>,
    %c3_i32 = arith.constant 3 : i32
    %c8_i32_38 = arith.constant 8 : i32
    %119 = arith.muli %c3_i32, %c8_i32_38 : i32
    %120 = tpu.assume_multiple %119, 8 : i32
    %121 = arith.index_cast %120 : i32 to index
    %c0_39 = arith.constant 0 : index
    %122 = vector.load %arg12[%121, %c0_39] : memref<64x384xf32, #tpu.memory_space<vmem>>, vector<8x384xf32>
    %cst_40 = arith.constant dense<0.000000e+00> : vector<8x384xf32>
    %123 = tpu.matmul %116, %17, %cst_40 {dimension_numbers = #tpu.dot_dimension_numbers<[1], [0], [0], [1], [0, 0, 1, 1], [], []>} : vector<8x128xf32>, vector<128x384xf32>, vector<8x384xf32> -> vector<8x384xf32>
    %124 = vector.extract_strided_slice %122 {offsets = [0, 0], sizes = [8, 128], strides = [1, 1]} : vector<8x384xf32> to vector<8x128xf32>
    %125 = vector.extract_strided_slice %123 {offsets = [0, 0], sizes = [8, 128], strides = [1, 1]} : vector<8x384xf32> to vector<8x128xf32>
    %126 = arith.addf %124, %125 : vector<8x128xf32>
    %127 = arith.negf %126 : vector<8x128xf32>
    %128 = math.exp %127 : vector<8x128xf32>
    %cst_41 = arith.constant 1.000000e+00 : f32
    %129 = vector.broadcast %cst_41 : f32 to vector<8x128xf32>
    %130 = arith.addf %129, %128 : vector<8x128xf32>
    %131 = arith.divf %129, %130 : vector<8x128xf32>
    %132 = vector.extract_strided_slice %122 {offsets = [0, 128], sizes = [8, 128], strides = [1, 1]} : vector<8x384xf32> to vector<8x128xf32>
    %133 = vector.extract_strided_slice %123 {offsets = [0, 128], sizes = [8, 128], strides = [1, 1]} : vector<8x384xf32> to vector<8x128xf32>
    %134 = arith.addf %132, %133 : vector<8x128xf32>
    %135 = arith.negf %134 : vector<8x128xf32>
    %136 = math.exp %135 : vector<8x128xf32>
    %cst_42 = arith.constant 1.000000e+00 : f32
    %137 = vector.broadcast %cst_42 : f32 to vector<8x128xf32>
    %138 = arith.addf %137, %136 : vector<8x128xf32>
    %139 = arith.divf %137, %138 : vector<8x128xf32>
    %140 = vector.extract_strided_slice %122 {offsets = [0, 256], sizes = [8, 128], strides = [1, 1]} : vector<8x384xf32> to vector<8x128xf32>
    %141 = vector.extract_strided_slice %123 {offsets = [0, 256], sizes = [8, 128], strides = [1, 1]} : vector<8x384xf32> to vector<8x128xf32>
    %142 = vector.broadcast %18 : vector<1x128xf32> to vector<8x128xf32>
    %143 = arith.addf %141, %142 : vector<8x128xf32>
    %144 = arith.mulf %131, %143 : vector<8x128xf32>
    %145 = arith.addf %140, %144 : vector<8x128xf32>
    %146 = math.tanh %145 : vector<8x128xf32>
    %147 = arith.subf %116, %146 : vector<8x128xf32>
    %148 = arith.mulf %139, %147 : vector<8x128xf32>
    %149 = arith.addf %146, %148 : vector<8x128xf32>
    %150 = arith.index_cast %120 : i32 to index
    %c0_43 = arith.constant 0 : index
    %151 = vector.load %arg13[%150, %c0_43] : memref<64x128xf32, #tpu.memory_space<vmem>>, vector<8x128xf32>
    tpu.vector_store %arg13[%150, %c0_43], %149 {strides = array<i32>} : memref<64x128xf32, #tpu.memory_space<vmem>>, vector<8x128xf32>,
    %c4_i32 = arith.constant 4 : i32
    %c8_i32_44 = arith.constant 8 : i32
    %152 = arith.muli %c4_i32, %c8_i32_44 : i32
    %153 = tpu.assume_multiple %152, 8 : i32
    %154 = arith.index_cast %153 : i32 to index
    %c0_45 = arith.constant 0 : index
    %155 = vector.load %arg12[%154, %c0_45] : memref<64x384xf32, #tpu.memory_space<vmem>>, vector<8x384xf32>
    %cst_46 = arith.constant dense<0.000000e+00> : vector<8x384xf32>
    %156 = tpu.matmul %149, %17, %cst_46 {dimension_numbers = #tpu.dot_dimension_numbers<[1], [0], [0], [1], [0, 0, 1, 1], [], []>} : vector<8x128xf32>, vector<128x384xf32>, vector<8x384xf32> -> vector<8x384xf32>
    %157 = vector.extract_strided_slice %155 {offsets = [0, 0], sizes = [8, 128], strides = [1, 1]} : vector<8x384xf32> to vector<8x128xf32>
    %158 = vector.extract_strided_slice %156 {offsets = [0, 0], sizes = [8, 128], strides = [1, 1]} : vector<8x384xf32> to vector<8x128xf32>
    %159 = arith.addf %157, %158 : vector<8x128xf32>
    %160 = arith.negf %159 : vector<8x128xf32>
    %161 = math.exp %160 : vector<8x128xf32>
    %cst_47 = arith.constant 1.000000e+00 : f32
    %162 = vector.broadcast %cst_47 : f32 to vector<8x128xf32>
    %163 = arith.addf %162, %161 : vector<8x128xf32>
    %164 = arith.divf %162, %163 : vector<8x128xf32>
    %165 = vector.extract_strided_slice %155 {offsets = [0, 128], sizes = [8, 128], strides = [1, 1]} : vector<8x384xf32> to vector<8x128xf32>
    %166 = vector.extract_strided_slice %156 {offsets = [0, 128], sizes = [8, 128], strides = [1, 1]} : vector<8x384xf32> to vector<8x128xf32>
    %167 = arith.addf %165, %166 : vector<8x128xf32>
    %168 = arith.negf %167 : vector<8x128xf32>
    %169 = math.exp %168 : vector<8x128xf32>
    %cst_48 = arith.constant 1.000000e+00 : f32
    %170 = vector.broadcast %cst_48 : f32 to vector<8x128xf32>
    %171 = arith.addf %170, %169 : vector<8x128xf32>
    %172 = arith.divf %170, %171 : vector<8x128xf32>
    %173 = vector.extract_strided_slice %155 {offsets = [0, 256], sizes = [8, 128], strides = [1, 1]} : vector<8x384xf32> to vector<8x128xf32>
    %174 = vector.extract_strided_slice %156 {offsets = [0, 256], sizes = [8, 128], strides = [1, 1]} : vector<8x384xf32> to vector<8x128xf32>
    %175 = vector.broadcast %18 : vector<1x128xf32> to vector<8x128xf32>
    %176 = arith.addf %174, %175 : vector<8x128xf32>
    %177 = arith.mulf %164, %176 : vector<8x128xf32>
    %178 = arith.addf %173, %177 : vector<8x128xf32>
    %179 = math.tanh %178 : vector<8x128xf32>
    %180 = arith.subf %149, %179 : vector<8x128xf32>
    %181 = arith.mulf %172, %180 : vector<8x128xf32>
    %182 = arith.addf %179, %181 : vector<8x128xf32>
    %183 = arith.index_cast %153 : i32 to index
    %c0_49 = arith.constant 0 : index
    %184 = vector.load %arg13[%183, %c0_49] : memref<64x128xf32, #tpu.memory_space<vmem>>, vector<8x128xf32>
    tpu.vector_store %arg13[%183, %c0_49], %182 {strides = array<i32>} : memref<64x128xf32, #tpu.memory_space<vmem>>, vector<8x128xf32>,
    %c5_i32 = arith.constant 5 : i32
    %c8_i32_50 = arith.constant 8 : i32
    %185 = arith.muli %c5_i32, %c8_i32_50 : i32
    %186 = tpu.assume_multiple %185, 8 : i32
    %187 = arith.index_cast %186 : i32 to index
    %c0_51 = arith.constant 0 : index
    %188 = vector.load %arg12[%187, %c0_51] : memref<64x384xf32, #tpu.memory_space<vmem>>, vector<8x384xf32>
    %cst_52 = arith.constant dense<0.000000e+00> : vector<8x384xf32>
    %189 = tpu.matmul %182, %17, %cst_52 {dimension_numbers = #tpu.dot_dimension_numbers<[1], [0], [0], [1], [0, 0, 1, 1], [], []>} : vector<8x128xf32>, vector<128x384xf32>, vector<8x384xf32> -> vector<8x384xf32>
    %190 = vector.extract_strided_slice %188 {offsets = [0, 0], sizes = [8, 128], strides = [1, 1]} : vector<8x384xf32> to vector<8x128xf32>
    %191 = vector.extract_strided_slice %189 {offsets = [0, 0], sizes = [8, 128], strides = [1, 1]} : vector<8x384xf32> to vector<8x128xf32>
    %192 = arith.addf %190, %191 : vector<8x128xf32>
    %193 = arith.negf %192 : vector<8x128xf32>
    %194 = math.exp %193 : vector<8x128xf32>
    %cst_53 = arith.constant 1.000000e+00 : f32
    %195 = vector.broadcast %cst_53 : f32 to vector<8x128xf32>
    %196 = arith.addf %195, %194 : vector<8x128xf32>
    %197 = arith.divf %195, %196 : vector<8x128xf32>
    %198 = vector.extract_strided_slice %188 {offsets = [0, 128], sizes = [8, 128], strides = [1, 1]} : vector<8x384xf32> to vector<8x128xf32>
    %199 = vector.extract_strided_slice %189 {offsets = [0, 128], sizes = [8, 128], strides = [1, 1]} : vector<8x384xf32> to vector<8x128xf32>
    %200 = arith.addf %198, %199 : vector<8x128xf32>
    %201 = arith.negf %200 : vector<8x128xf32>
    %202 = math.exp %201 : vector<8x128xf32>
    %cst_54 = arith.constant 1.000000e+00 : f32
    %203 = vector.broadcast %cst_54 : f32 to vector<8x128xf32>
    %204 = arith.addf %203, %202 : vector<8x128xf32>
    %205 = arith.divf %203, %204 : vector<8x128xf32>
    %206 = vector.extract_strided_slice %188 {offsets = [0, 256], sizes = [8, 128], strides = [1, 1]} : vector<8x384xf32> to vector<8x128xf32>
    %207 = vector.extract_strided_slice %189 {offsets = [0, 256], sizes = [8, 128], strides = [1, 1]} : vector<8x384xf32> to vector<8x128xf32>
    %208 = vector.broadcast %18 : vector<1x128xf32> to vector<8x128xf32>
    %209 = arith.addf %207, %208 : vector<8x128xf32>
    %210 = arith.mulf %197, %209 : vector<8x128xf32>
    %211 = arith.addf %206, %210 : vector<8x128xf32>
    %212 = math.tanh %211 : vector<8x128xf32>
    %213 = arith.subf %182, %212 : vector<8x128xf32>
    %214 = arith.mulf %205, %213 : vector<8x128xf32>
    %215 = arith.addf %212, %214 : vector<8x128xf32>
    %216 = arith.index_cast %186 : i32 to index
    %c0_55 = arith.constant 0 : index
    %217 = vector.load %arg13[%216, %c0_55] : memref<64x128xf32, #tpu.memory_space<vmem>>, vector<8x128xf32>
    tpu.vector_store %arg13[%216, %c0_55], %215 {strides = array<i32>} : memref<64x128xf32, #tpu.memory_space<vmem>>, vector<8x128xf32>,
    %c6_i32 = arith.constant 6 : i32
    %c8_i32_56 = arith.constant 8 : i32
    %218 = arith.muli %c6_i32, %c8_i32_56 : i32
    %219 = tpu.assume_multiple %218, 8 : i32
    %220 = arith.index_cast %219 : i32 to index
    %c0_57 = arith.constant 0 : index
    %221 = vector.load %arg12[%220, %c0_57] : memref<64x384xf32, #tpu.memory_space<vmem>>, vector<8x384xf32>
    %cst_58 = arith.constant dense<0.000000e+00> : vector<8x384xf32>
    %222 = tpu.matmul %215, %17, %cst_58 {dimension_numbers = #tpu.dot_dimension_numbers<[1], [0], [0], [1], [0, 0, 1, 1], [], []>} : vector<8x128xf32>, vector<128x384xf32>, vector<8x384xf32> -> vector<8x384xf32>
    %223 = vector.extract_strided_slice %221 {offsets = [0, 0], sizes = [8, 128], strides = [1, 1]} : vector<8x384xf32> to vector<8x128xf32>
    %224 = vector.extract_strided_slice %222 {offsets = [0, 0], sizes = [8, 128], strides = [1, 1]} : vector<8x384xf32> to vector<8x128xf32>
    %225 = arith.addf %223, %224 : vector<8x128xf32>
    %226 = arith.negf %225 : vector<8x128xf32>
    %227 = math.exp %226 : vector<8x128xf32>
    %cst_59 = arith.constant 1.000000e+00 : f32
    %228 = vector.broadcast %cst_59 : f32 to vector<8x128xf32>
    %229 = arith.addf %228, %227 : vector<8x128xf32>
    %230 = arith.divf %228, %229 : vector<8x128xf32>
    %231 = vector.extract_strided_slice %221 {offsets = [0, 128], sizes = [8, 128], strides = [1, 1]} : vector<8x384xf32> to vector<8x128xf32>
    %232 = vector.extract_strided_slice %222 {offsets = [0, 128], sizes = [8, 128], strides = [1, 1]} : vector<8x384xf32> to vector<8x128xf32>
    %233 = arith.addf %231, %232 : vector<8x128xf32>
    %234 = arith.negf %233 : vector<8x128xf32>
    %235 = math.exp %234 : vector<8x128xf32>
    %cst_60 = arith.constant 1.000000e+00 : f32
    %236 = vector.broadcast %cst_60 : f32 to vector<8x128xf32>
    %237 = arith.addf %236, %235 : vector<8x128xf32>
    %238 = arith.divf %236, %237 : vector<8x128xf32>
    %239 = vector.extract_strided_slice %221 {offsets = [0, 256], sizes = [8, 128], strides = [1, 1]} : vector<8x384xf32> to vector<8x128xf32>
    %240 = vector.extract_strided_slice %222 {offsets = [0, 256], sizes = [8, 128], strides = [1, 1]} : vector<8x384xf32> to vector<8x128xf32>
    %241 = vector.broadcast %18 : vector<1x128xf32> to vector<8x128xf32>
    %242 = arith.addf %240, %241 : vector<8x128xf32>
    %243 = arith.mulf %230, %242 : vector<8x128xf32>
    %244 = arith.addf %239, %243 : vector<8x128xf32>
    %245 = math.tanh %244 : vector<8x128xf32>
    %246 = arith.subf %215, %245 : vector<8x128xf32>
    %247 = arith.mulf %238, %246 : vector<8x128xf32>
    %248 = arith.addf %245, %247 : vector<8x128xf32>
    %249 = arith.index_cast %219 : i32 to index
    %c0_61 = arith.constant 0 : index
    %250 = vector.load %arg13[%249, %c0_61] : memref<64x128xf32, #tpu.memory_space<vmem>>, vector<8x128xf32>
    tpu.vector_store %arg13[%249, %c0_61], %248 {strides = array<i32>} : memref<64x128xf32, #tpu.memory_space<vmem>>, vector<8x128xf32>,
    %c7_i32 = arith.constant 7 : i32
    %c8_i32_62 = arith.constant 8 : i32
    %251 = arith.muli %c7_i32, %c8_i32_62 : i32
    %252 = tpu.assume_multiple %251, 8 : i32
    %253 = arith.index_cast %252 : i32 to index
    %c0_63 = arith.constant 0 : index
    %254 = vector.load %arg12[%253, %c0_63] : memref<64x384xf32, #tpu.memory_space<vmem>>, vector<8x384xf32>
    %cst_64 = arith.constant dense<0.000000e+00> : vector<8x384xf32>
    %255 = tpu.matmul %248, %17, %cst_64 {dimension_numbers = #tpu.dot_dimension_numbers<[1], [0], [0], [1], [0, 0, 1, 1], [], []>} : vector<8x128xf32>, vector<128x384xf32>, vector<8x384xf32> -> vector<8x384xf32>
    %256 = vector.extract_strided_slice %254 {offsets = [0, 0], sizes = [8, 128], strides = [1, 1]} : vector<8x384xf32> to vector<8x128xf32>
    %257 = vector.extract_strided_slice %255 {offsets = [0, 0], sizes = [8, 128], strides = [1, 1]} : vector<8x384xf32> to vector<8x128xf32>
    %258 = arith.addf %256, %257 : vector<8x128xf32>
    %259 = arith.negf %258 : vector<8x128xf32>
    %260 = math.exp %259 : vector<8x128xf32>
    %cst_65 = arith.constant 1.000000e+00 : f32
    %261 = vector.broadcast %cst_65 : f32 to vector<8x128xf32>
    %262 = arith.addf %261, %260 : vector<8x128xf32>
    %263 = arith.divf %261, %262 : vector<8x128xf32>
    %264 = vector.extract_strided_slice %254 {offsets = [0, 128], sizes = [8, 128], strides = [1, 1]} : vector<8x384xf32> to vector<8x128xf32>
    %265 = vector.extract_strided_slice %255 {offsets = [0, 128], sizes = [8, 128], strides = [1, 1]} : vector<8x384xf32> to vector<8x128xf32>
    %266 = arith.addf %264, %265 : vector<8x128xf32>
    %267 = arith.negf %266 : vector<8x128xf32>
    %268 = math.exp %267 : vector<8x128xf32>
    %cst_66 = arith.constant 1.000000e+00 : f32
    %269 = vector.broadcast %cst_66 : f32 to vector<8x128xf32>
    %270 = arith.addf %269, %268 : vector<8x128xf32>
    %271 = arith.divf %269, %270 : vector<8x128xf32>
    %272 = vector.extract_strided_slice %254 {offsets = [0, 256], sizes = [8, 128], strides = [1, 1]} : vector<8x384xf32> to vector<8x128xf32>
    %273 = vector.extract_strided_slice %255 {offsets = [0, 256], sizes = [8, 128], strides = [1, 1]} : vector<8x384xf32> to vector<8x128xf32>
    %274 = vector.broadcast %18 : vector<1x128xf32> to vector<8x128xf32>
    %275 = arith.addf %273, %274 : vector<8x128xf32>
    %276 = arith.mulf %263, %275 : vector<8x128xf32>
    %277 = arith.addf %272, %276 : vector<8x128xf32>
    %278 = math.tanh %277 : vector<8x128xf32>
    %279 = arith.subf %248, %278 : vector<8x128xf32>
    %280 = arith.mulf %271, %279 : vector<8x128xf32>
    %281 = arith.addf %278, %280 : vector<8x128xf32>
    %282 = arith.index_cast %252 : i32 to index
    %c0_67 = arith.constant 0 : index
    %283 = vector.load %arg13[%282, %c0_67] : memref<64x128xf32, #tpu.memory_space<vmem>>, vector<8x128xf32>
    tpu.vector_store %arg13[%282, %c0_67], %281 {strides = array<i32>} : memref<64x128xf32, #tpu.memory_space<vmem>>, vector<8x128xf32>,
    %c8_i32_68 = arith.constant 8 : i32
    %c0_69 = arith.constant 0 : index
    %c0_70 = arith.constant 0 : index
    %284 = vector.load %arg11[%c0_69, %c0_70] : memref<8x128xf32, #tpu.memory_space<vmem>>, vector<8x128xf32>
    tpu.vector_store %arg11[%c0_69, %c0_70], %281 {strides = array<i32>} : memref<8x128xf32, #tpu.memory_space<vmem>>, vector<8x128xf32>,
    %c0_71 = arith.constant 0 : index
    %c0_72 = arith.constant 0 : index
    %285 = vector.load %arg13[%c0_71, %c0_72] : memref<64x128xf32, #tpu.memory_space<vmem>>, vector<64x128xf32>
    %c0_73 = arith.constant 0 : index
    %c0_74 = arith.constant 0 : index
    %286 = vector.load %arg8[%c0_73, %c0_74] : memref<128x128xf32, #tpu.memory_space<vmem>>, vector<128x128xf32>
    %cst_75 = arith.constant dense<0.000000e+00> : vector<64x128xf32>
    %287 = tpu.matmul %285, %286, %cst_75 {dimension_numbers = #tpu.dot_dimension_numbers<[1], [0], [0], [1], [0, 0, 1, 1], [], []>} : vector<64x128xf32>, vector<128x128xf32>, vector<64x128xf32> -> vector<64x128xf32>
    %c0_76 = arith.constant 0 : index
    %c0_77 = arith.constant 0 : index
    %288 = vector.load %arg9[%c0_76, %c0_77] : memref<1x128xf32, #tpu.memory_space<vmem>>, vector<1x128xf32>
    %289 = vector.broadcast %288 : vector<1x128xf32> to vector<64x128xf32>
    %290 = arith.addf %287, %289 : vector<64x128xf32>
    %c0_78 = arith.constant 0 : index
    %c0_79 = arith.constant 0 : index
    %291 = vector.load %arg10[%c0_78, %c0_79] : memref<64x128xf32, #tpu.memory_space<vmem>>, vector<64x128xf32>
    tpu.vector_store %arg10[%c0_78, %c0_79], %290 {strides = array<i32>} : memref<64x128xf32, #tpu.memory_space<vmem>>, vector<64x128xf32>,
    return
  }
  func.func @transform_0(%arg0: i32) -> (i32, i32) {
    %c0_i32 = arith.constant 0 : i32
    %c0_i32_0 = arith.constant 0 : i32
    return %arg0, %c0_i32 : i32, i32
  }
  func.func @transform_1(%arg0: i32) -> (i32, i32) {
    %c0_i32 = arith.constant 0 : i32
    %c0_i32_0 = arith.constant 0 : i32
    %c0_i32_1 = arith.constant 0 : i32
    return %c0_i32, %c0_i32_0 : i32, i32
  }
  func.func @transform_2(%arg0: i32) -> (i32, i32) {
    %c0_i32 = arith.constant 0 : i32
    %c0_i32_0 = arith.constant 0 : i32
    %c0_i32_1 = arith.constant 0 : i32
    return %c0_i32, %c0_i32_0 : i32, i32
  }
  func.func @transform_3(%arg0: i32) -> (i32, i32) {
    %c0_i32 = arith.constant 0 : i32
    %c0_i32_0 = arith.constant 0 : i32
    %c0_i32_1 = arith.constant 0 : i32
    return %c0_i32, %c0_i32_0 : i32, i32
  }
  func.func @transform_4(%arg0: i32) -> (i32, i32) {
    %c0_i32 = arith.constant 0 : i32
    %c0_i32_0 = arith.constant 0 : i32
    %c0_i32_1 = arith.constant 0 : i32
    return %c0_i32, %c0_i32_0 : i32, i32
  }
  func.func @transform_5(%arg0: i32) -> (i32, i32) {
    %c0_i32 = arith.constant 0 : i32
    %c0_i32_0 = arith.constant 0 : i32
    %c0_i32_1 = arith.constant 0 : i32
    return %c0_i32, %c0_i32_0 : i32, i32
  }
  func.func @transform_6(%arg0: i32) -> (i32, i32) {
    %c0_i32 = arith.constant 0 : i32
    %c0_i32_0 = arith.constant 0 : i32
    %c0_i32_1 = arith.constant 0 : i32
    return %c0_i32, %c0_i32_0 : i32, i32
  }
  func.func @transform_7(%arg0: i32) -> (i32, i32) {
    %c0_i32 = arith.constant 0 : i32
    %c0_i32_0 = arith.constant 0 : i32
    %c0_i32_1 = arith.constant 0 : i32
    return %c0_i32, %c0_i32_0 : i32, i32
  }
  func.func @transform_8(%arg0: i32) -> (i32, i32) {
    %c0_i32 = arith.constant 0 : i32
    %c0_i32_0 = arith.constant 0 : i32
    %c0_i32_1 = arith.constant 0 : i32
    return %c0_i32, %c0_i32_0 : i32, i32
  }
  func.func @transform_9(%arg0: i32) -> (i32, i32) {
    %c0_i32 = arith.constant 0 : i32
    %c0_i32_0 = arith.constant 0 : i32
    return %arg0, %c0_i32 : i32, i32
  }
}

</mosaic_0001>

<bundles_post_ra>
// kernel: rnn_neural_decoder_forward.1
= control target key start
LH: loop header
LB: loop body
LE: loop exit
PB: predicated region body
PF: predicated region fallthrough
CT: control target
= control target key end

     0   :  { %vm51_vm0 = vcmask 130048   ;;  %s2873_s1 = inlined_call_operand.vmem [shape: f32[16,128], index: 1, kind: input, shape index: {}]   ;;  %s2874_s0 = inlined_call_operand.vmem [shape: f32[64,16], index: 0, kind: input, shape index: {}]   ;;  %s2875_s3 = inlined_call_operand.vmem [shape: f32[128,384], index: 3, kind: input, shape index: {}]   ;;  %s2876_s5 = inlined_call_operand.vmem [shape: f32[128,384], index: 5, kind: input, shape index: {}]   ;;  %s2877_s2 = inlined_call_operand.vmem [shape: f32[1,128], index: 2, kind: input, shape index: {}]   ;;  %s2878_s6 = inlined_call_operand.vmem [shape: f32[1,128], index: 6, kind: input, shape index: {}]   ;;  %s2879_s4 = inlined_call_operand.vmem [shape: f32[1,384], index: 4, kind: input, shape index: {}]   ;;  %s2880_s7 = inlined_call_operand.vmem [shape: f32[128,128], index: 7, kind: input, shape index: {}]   ;;  %s2881_s8 = inlined_call_operand.vmem [shape: f32[1,128], index: 8, kind: input, shape index: {}]   ;;  %s2882_s9 = inlined_call_operand.vmem [shape: f32[64,128], index: 9, kind: output, shape index: {}]  }
   0x1   :  { %v46_v0 = vld [vmem:[%s2873_s1 + $0x8] sm:$0xff]  ;;  %v45_v1 = vld [vmem:[%s2873_s1] sm:$0xff]  ;;  %v171_v5 = vld [vmem:[%s2875_s3 + $0x170] sm:$0xff] }
   0x2   :  { %90 = vmatpush.msra.mxu1 %v46_v0  ;;  %v37_v2 = vld [vmem:[%s2874_s0] sm:$0xff]  ;;  %1413 = vmatpush.msra.mxu2 %v46_v0  ;;  %v170_v4 = vld [vmem:[%s2875_s3 + $0x168] sm:$0xff]  ;;  %v172_v6 = vld [vmem:[%s2875_s3 + $0x178] sm:$0xff] }
   0x3   :  { %v41_v3 = vld [vmem:[%s2874_s0 + $0x20] sm:$0xff]  ;;  %v167_v7 = vld [vmem:[%s2875_s3 + $0x150] sm:$0xff]  ;;  %v168_v8 = vld [vmem:[%s2875_s3 + $0x158] sm:$0xff]  ;;  %263 = vmatpush.msra.mxu3 %v172_v6 }
   0x4   :  { %91 = vmatpush.msra.mxu1 %v45_v1  ;;  %1414 = vmatpush.msra.mxu2 %v45_v1  ;;  %v169_v9 = vld [vmem:[%s2875_s3 + $0x160] sm:$0xff]  ;;  %v1634_v10 = vld [vmem:[%s2876_s5 + $0x168] sm:$0xff]  ;;  %v164_v11 = vld [vmem:[%s2875_s3 + $0x138] sm:$0xff] }
   0x5   :  { %1389 = vmatmul.msk.f32.vlgmr.msra.gmra.mxu1 %vm51_vm0, %v37_v2  ;;  %1393 = vmatmul.msk.f32.vlgmr.msra.gmra.mxu2 %vm51_vm0, %v41_v3  ;;  %v165_v12 = vld [vmem:[%s2875_s3 + $0x140] sm:$0xff]  ;;  %v1646_v13 = vld [vmem:[%s2876_s5 + $0x150] sm:$0xff]  ;;  %v166_v14 = vld [vmem:[%s2875_s3 + $0x148] sm:$0xff] }
   0x6   :  { %181 = vmatpush.msrb.mxu1 %v170_v4  ;;  %222 = vmatpush.msrb.mxu2 %v171_v5  ;;  %v161_v15 = vld [vmem:[%s2875_s3 + $0x120] sm:$0xff]  ;;  %v162_v16 = vld [vmem:[%s2875_s3 + $0x128] sm:$0xff]  ;;  %v1661_v17 = vld [vmem:[%s2876_s5 + $0x138] sm:$0xff] }
   0x7   :  { %384 = vmatpush.msra.mxu0 %v1634_v10  ;;  %264 = vmatpush.msra.mxu3 %v169_v9  ;;  %v38_v18 = vld [vmem:[%s2874_s0 + $0x8] sm:$0xff]  ;;  %v163_v20 = vld [vmem:[%s2875_s3 + $0x130] sm:$0xff]  ;;  %v1682_v23 = vld [vmem:[%s2876_s5 + $0x120] sm:$0xff] }
   0x8   :  { %182 = vmatpush.msrb.mxu1 %v167_v7  ;;  %223 = vmatpush.msrb.mxu2 %v168_v8  ;;  %v42_v19 = vld [vmem:[%s2874_s0 + $0x28] sm:$0xff]  ;;  %v159_v22 = vld [vmem:[%s2875_s3 + $0x110] sm:$0xff]  ;;  %v160_v24 = vld [vmem:[%s2875_s3 + $0x118] sm:$0xff] }
   0x9   :  { %385 = vmatpush.msra.mxu0 %v1646_v13  ;;  %265 = vmatpush.msra.mxu3 %v166_v14  ;;  %v158_v21 = vld [vmem:[%s2875_s3 + $0x108] sm:$0xff]  ;;  %v155_v25 = vld [vmem:[%s2875_s3 + $0xf0] sm:$0xff]  ;;  %v156_v26 = vld [vmem:[%s2875_s3 + $0xf8] sm:$0xff] }
   0xa   :  { %183 = vmatpush.msrb.mxu1 %v164_v11  ;;  %224 = vmatpush.msrb.mxu2 %v165_v12  ;;  %v1698_v27 = vld [vmem:[%s2876_s5 + $0x108] sm:$0xff]  ;;  %v157_v28 = vld [vmem:[%s2875_s3 + $0x100] sm:$0xff]  ;;  %v152_v29 = vld [vmem:[%s2875_s3 + $0xd8] sm:$0xff]  ;;  %v1548_v12 = vmov 0.0  }
   0xb   :  { %386 = vmatpush.msra.mxu0 %v1661_v17  ;;  %266 = vmatpush.msra.mxu3 %v163_v20  ;;  %v153_v30 = vld [vmem:[%s2875_s3 + $0xe0] sm:$0xff]  ;;  %v1713_v31 = vld [vmem:[%s2876_s5 + $0xf0] sm:$0xff]  ;;  %v154_v32 = vld [vmem:[%s2875_s3 + $0xe8] sm:$0xff] }
   0xc   :  { %184 = vmatpush.msrb.mxu1 %v161_v15  ;;  %225 = vmatpush.msrb.mxu2 %v162_v16  ;;  %v149_v33 = vld [vmem:[%s2875_s3 + $0xc0] sm:$0xff]  ;;  %v39_v34 = vld [vmem:[%s2874_s0 + $0x10] sm:$0xff]  ;;  %v150_v36 = vld [vmem:[%s2875_s3 + $0xc8] sm:$0xff] }
   0xd   :  { %1390 = vmatmul.msk.f32.gmra.mxu1 %vm51_vm0, %v38_v18  ;;  %1394 = vmatmul.msk.f32.gmra.mxu2 %vm51_vm0, %v42_v19  ;;  %v43_v35 = vld [vmem:[%s2874_s0 + $0x30] sm:$0xff]  ;;  %v1738_v38 = vld [vmem:[%s2876_s5 + $0xd8] sm:$0xff]  ;;  %v146_v39 = vld [vmem:[%s2875_s3 + $0xa8] sm:$0xff] }
   0xe   :  { %185 = vmatpush.msrb.mxu1 %v158_v21  ;;  %226 = vmatpush.msrb.mxu2 %v159_v22  ;;  %v151_v37 = vld [vmem:[%s2875_s3 + $0xd0] sm:$0xff]  ;;  %v148_v41 = vld [vmem:[%s2875_s3 + $0xb8] sm:$0xff]  ;;  %v1754_v42 = vld [vmem:[%s2876_s5 + $0xc0] sm:$0xff] }
   0xf   :  { %387 = vmatpush.msra.mxu0 %v1682_v23  ;;  %267 = vmatpush.msra.mxu3 %v160_v24  ;;  %v147_v40 = vld [vmem:[%s2875_s3 + $0xb0] sm:$0xff]  ;;  %v144_v44 = vld [vmem:[%s2875_s3 + $0x98] sm:$0xff]  ;;  %v145_v45 = vld [vmem:[%s2875_s3 + $0xa0] sm:$0xff] }
  0x10   :  { %186 = vmatpush.msrb.mxu1 %v155_v25  ;;  %227 = vmatpush.msrb.mxu2 %v156_v26  ;;  %v143_v43 = vld [vmem:[%s2875_s3 + $0x90] sm:$0xff]  ;;  %v1769_v46 = vld [vmem:[%s2876_s5 + $0xa8] sm:$0xff]  ;;  %v140_v47 = vld [vmem:[%s2875_s3 + $0x78] sm:$0xff] }
  0x11   :  { %388 = vmatpush.msra.mxu0 %v1698_v27  ;;  %268 = vmatpush.msra.mxu3 %v157_v28  ;;  %v141_v48 = vld [vmem:[%s2875_s3 + $0x80] sm:$0xff]  ;;  %v142_v49 = vld [vmem:[%s2875_s3 + $0x88] sm:$0xff]  ;;  %v40_v50 = vld [vmem:[%s2874_s0 + $0x18] sm:$0xff] }
  0x12   :  { %187 = vmatpush.msrb.mxu1 %v152_v29  ;;  %228 = vmatpush.msrb.mxu2 %v153_v30  ;;  %v44_v51 = vld [vmem:[%s2874_s0 + $0x38] sm:$0xff]  ;;  %v1791_v52 = vld [vmem:[%s2876_s5 + $0x90] sm:$0xff]  ;;  %v137_v53 = vld [vmem:[%s2875_s3 + $0x60] sm:$0xff] }
  0x13   :  { %389 = vmatpush.msra.mxu0 %v1713_v31  ;;  %269 = vmatpush.msra.mxu3 %v154_v32  ;;  %v138_v54 = vld [vmem:[%s2875_s3 + $0x68] sm:$0xff]  ;;  %v139_v55 = vld [vmem:[%s2875_s3 + $0x70] sm:$0xff]  ;;  %v1807_v56 = vld [vmem:[%s2876_s5 + $0x78] sm:$0xff] }
  0x14   :  { %188 = vmatpush.msrb.mxu1 %v149_v33  ;;  %229 = vmatpush.msrb.mxu2 %v150_v36  ;;  %v134_v57 = vld [vmem:[%s2875_s3 + $0x48] sm:$0xff]  ;;  %v135_v58 = vld [vmem:[%s2875_s3 + $0x50] sm:$0xff]  ;;  %v136_v59 = vld [vmem:[%s2875_s3 + $0x58] sm:$0xff] }
  0x15   :  { %1391 = vmatmul.msk.f32.gmra.mxu1 %vm51_vm0, %v39_v34  ;;  %1395 = vmatmul.msk.f32.gmra.mxu2 %vm51_vm0, %v43_v35  ;;  %v1822_v60 = vld [vmem:[%s2876_s5 + $0x60] sm:$0xff]  ;;  %v131_v61 = vld [vmem:[%s2875_s3 + $0x30] sm:$0xff]  ;;  %v132_v62 = vld [vmem:[%s2875_s3 + $0x38] sm:$0xff] }
  0x16   :  { %270 = vmatpush.msra.mxu3 %v151_v37  ;;  %390 = vmatpush.msra.mxu0 %v1738_v38  ;;  %v133_v63 = vld [vmem:[%s2875_s3 + $0x40] sm:$0xff]  ;;  %v1838_v0 = vld [vmem:[%s2876_s5 + $0x48] sm:$0xff]  ;;  %v128_v1 = vld [vmem:[%s2875_s3 + $0x18] sm:$0xff] }
  0x17   :  { %189 = vmatpush.msrb.mxu1 %v146_v39  ;;  %230 = vmatpush.msrb.mxu2 %v147_v40  ;;  %v129_v2 = vld [vmem:[%s2875_s3 + $0x20] sm:$0xff]  ;;  %v130_v3 = vld [vmem:[%s2875_s3 + $0x28] sm:$0xff]  ;;  %v1853_v4 = vld [vmem:[%s2876_s5 + $0x30] sm:$0xff] }
  0x18   :  { %271 = vmatpush.msra.mxu3 %v148_v41  ;;  %391 = vmatpush.msra.mxu0 %v1754_v42  ;;  %v125_v5 = vld [vmem:[%s2875_s3] sm:$0xff]  ;;  %v126_v6 = vld [vmem:[%s2875_s3 + $0x8] sm:$0xff]  ;;  %v127_v7 = vld [vmem:[%s2875_s3 + $0x10] sm:$0xff] }
  0x19   :  { %190 = vmatpush.msrb.mxu1 %v143_v43  ;;  %231 = vmatpush.msrb.mxu2 %v144_v44  ;;  %v1868_v8 = vld [vmem:[%s2876_s5 + $0x18] sm:$0xff]  ;;  %v1874_v9 = vld [vmem:[%s2876_s5 + $0x170] sm:$0xff]  ;;  %v1879_v11 = vld [vmem:[%s2876_s5] sm:$0xff] }
  0x1a   :  { %272 = vmatpush.msra.mxu3 %v145_v45  ;;  %392 = vmatpush.msra.mxu0 %v1769_v46  ;;  %2897 = vst [vmem:[#allocation5_spill] sm:$0xff] %v1868_v8  ;;  %v1891_v14 = vld [vmem:[%s2876_s5 + $0x158] sm:$0xff]  ;;  %v1899_v15 = vld [vmem:[%s2876_s5 + $0x140] sm:$0xff]  ;;  %v1915_v18 = vld [vmem:[%s2876_s5 + $0x128] sm:$0xff] }
  0x1b   :  { %191 = vmatpush.msrb.mxu1 %v140_v47  ;;  %232 = vmatpush.msrb.mxu2 %v141_v48  ;;  %2898 = vst [vmem:[#allocation6_spill] sm:$0xff] %v1879_v11  ;;  %v1904_v16 = vld [vmem:[%s2876_s5 + $0x178] sm:$0xff]  ;;  %v1920_v19 = vld [vmem:[%s2876_s5 + $0x160] sm:$0xff]  ;;  %v1929_v20 = vld [vmem:[%s2876_s5 + $0x110] sm:$0xff] }
  0x1c   :  { %273 = vmatpush.msra.mxu3 %v142_v49  ;;  %393 = vmatpush.msra.mxu0 %v1791_v52  ;;  %v1934_v21 = vld [vmem:[%s2876_s5 + $0x148] sm:$0xff]  ;;  %v1944_v22 = vld [vmem:[%s2876_s5 + $0xf8] sm:$0xff]  ;;  %v1949_v24 = vld [vmem:[%s2876_s5 + $0x130] sm:$0xff] }
  0x1d   :  { %1392 = vmatmul.msk.f32.gmra.mxu1 %vm51_vm0, %v40_v50  ;;  %1396 = vmatmul.msk.f32.gmra.mxu2 %vm51_vm0, %v44_v51  ;;  %v1956_v25 = vld [vmem:[%s2877_s2] ss:$0 sm:$0xff]  ;;  %v1968_v28 = vld [vmem:[%s2876_s5 + $0x118] sm:$0xff]  ;;  %v1973_v29 = vld [vmem:[%s2876_s5 + $0xc8] sm:$0xff] }
  0x1e   :  { %192 = vmatpush.msrb.mxu1 %v137_v53  ;;  %233 = vmatpush.msrb.mxu2 %v138_v54  ;;  %v1963_v26 = vld [vmem:[%s2876_s5 + $0xe0] sm:$0xff]  ;;  %v1993_v35 = vld [vmem:[%s2876_s5 + $0xb0] sm:$0xff]  ;;  %v1998_v36 = vld [vmem:[%s2876_s5 + $0xe8] sm:$0xff] }
  0x1f   :  { %274 = vmatpush.msra.mxu3 %v139_v55  ;;  %394 = vmatpush.msra.mxu0 %v1807_v56  ;;  %v1980_v30 = vld [vmem:[%s2876_s5 + $0x100] sm:$0xff]  ;;  %v2003_v37 = vld [vmem:[%s2876_s5 + $0x98] sm:$0xff]  ;;  %v2010_v39 = vld [vmem:[%s2876_s5 + $0xd0] sm:$0xff] }
  0x20   :  { %193 = vmatpush.msrb.mxu1 %v134_v57  ;;  %234 = vmatpush.msrb.mxu2 %v135_v58  ;;  %v2023_v44 = vld [vmem:[%s2876_s5 + $0x80] sm:$0xff]  ;;  %v2028_v45 = vld [vmem:[%s2876_s5 + $0xb8] sm:$0xff]  ;;  %v2033_v47 = vld [vmem:[%s2876_s5 + $0x68] sm:$0xff] }
  0x21   :  { %275 = vmatpush.msra.mxu3 %v136_v59  ;;  %395 = vmatpush.msra.mxu0 %v1822_v60  ;;  %v2040_v48 = vld [vmem:[%s2876_s5 + $0xa0] sm:$0xff]  ;;  %v2053_v54 = vld [vmem:[%s2876_s5 + $0x50] sm:$0xff]  ;;  %v2058_v55 = vld [vmem:[%s2876_s5 + $0x88] sm:$0xff] }
  0x22   :  { %194 = vmatpush.msrb.mxu1 %v131_v61  ;;  %235 = vmatpush.msrb.mxu2 %v132_v62  ;;  %v2063_v57 = vld [vmem:[%s2876_s5 + $0x38] sm:$0xff]  ;;  %v2070_v58 = vld [vmem:[%s2876_s5 + $0x70] sm:$0xff] }
  0x23   :  { %276 = vmatpush.msra.mxu3 %v133_v63  ;;  %396 = vmatpush.msra.mxu0 %v1838_v0  ;;  %2899 = vst [vmem:[#allocation7_spill] sm:$0xff] %v2063_v57 }
  0x24   :  { %195 = vmatpush.msrb.mxu1 %v128_v1  ;;  %236 = vmatpush.msrb.mxu2 %v129_v2  ;;  %v2084_v2 = vld [vmem:[%s2876_s5 + $0x20] sm:$0xff] }
  0x25   :  { %277 = vmatpush.msra.mxu3 %v130_v3  ;;  %397 = vmatpush.msra.mxu0 %v1853_v4  ;;  %2900 = vst [vmem:[#allocation8_spill] sm:$0xff] %v2084_v2  ;;  %v2089_v3 = vld [vmem:[%s2876_s5 + $0x58] sm:$0xff] }
  0x26   :  { %196 = vmatpush.msrb.mxu1 %v125_v5  ;;  %237 = vmatpush.msrb.mxu2 %v126_v6  ;;  %v2094_v5 = vld [vmem:[%s2876_s5 + $0x40] sm:$0xff]  ;;  %v2101_v6 = vld [vmem:[%s2876_s5 + $0x8] sm:$0xff] }
  0x27   :  { %278 = vmatpush.msra.mxu3 %v127_v7  ;;  %398 = vmatpush.msra.mxu0 %v1868_v8  ;;  %2901 = vst [vmem:[#allocation9_spill] sm:$0xff] %v2101_v6  ;;  %v2106_v7 = vld [vmem:[%s2876_s5 + $0x28] sm:$0xff] }
  0x28   :  { %404 = vmatpush.msra.mxu1 %v1874_v9  ;;  %424 = vmatpush.msra.mxu2 %v1904_v16  ;;  %2902 = vst [vmem:[#allocation10_spill] sm:$0xff] %v2106_v7 }
  0x29   :  { %501 = vmatpush.msrb.mxu3 %v1634_v10  ;;  %399 = vmatpush.msra.mxu0 %v1879_v11 }
  0x2a   :  { %400 = vmatmul.f32.vlgmr.msra.gmra.mxu0 %v1548_v12  ;;  %405 = vmatpush.msra.mxu1 %v1891_v14 }
  0x2b   :  { %502 = vmatpush.msrb.mxu3 %v1646_v13  ;;  %521 = vmatpush.msrb.mxu0 %v1874_v9 }
  0x2c   :  { %406 = vmatpush.msra.mxu1 %v1899_v15  ;;  %425 = vmatpush.msra.mxu2 %v1920_v19 }
  0x2d   :  { %503 = vmatpush.msrb.mxu3 %v1661_v17  ;;  %522 = vmatpush.msrb.mxu0 %v1891_v14 }
  0x2e   :  { %407 = vmatpush.msra.mxu1 %v1915_v18  ;;  %426 = vmatpush.msra.mxu2 %v1934_v21 }
  0x2f   :  { %504 = vmatpush.msrb.mxu3 %v1682_v23  ;;  %523 = vmatpush.msrb.mxu0 %v1899_v15 }
  0x30   :  { %408 = vmatpush.msra.mxu1 %v1929_v20  ;;  %427 = vmatpush.msra.mxu2 %v1949_v24 }
  0x31   :  { %505 = vmatpush.msrb.mxu3 %v1698_v27  ;;  %524 = vmatpush.msrb.mxu0 %v1915_v18 }
  0x32   :  { %409 = vmatpush.msra.mxu1 %v1944_v22  ;;  %428 = vmatpush.msra.mxu2 %v1968_v28 }
  0x33   :  { %506 = vmatpush.msrb.mxu3 %v1713_v31  ;;  %525 = vmatpush.msrb.mxu0 %v1929_v20 }
  0x34   :  { %410 = vmatpush.msra.mxu1 %v1963_v26  ;;  %429 = vmatpush.msra.mxu2 %v1980_v30 }
  0x35   :  { %507 = vmatpush.msrb.mxu3 %v1738_v38  ;;  %526 = vmatpush.msrb.mxu0 %v1944_v22 }
  0x36   :  { %411 = vmatpush.msra.mxu1 %v1973_v29  ;;  %430 = vmatpush.msra.mxu2 %v1998_v36 }
  0x37   :  { %508 = vmatpush.msrb.mxu3 %v1754_v42  ;;  %527 = vmatpush.msrb.mxu0 %v1963_v26 }
  0x38   :  { %412 = vmatpush.msra.mxu1 %v1993_v35  ;;  %431 = vmatpush.msra.mxu2 %v2010_v39 }
  0x39   :  { %509 = vmatpush.msrb.mxu3 %v1769_v46  ;;  %528 = vmatpush.msrb.mxu0 %v1973_v29 }
  0x3a   :  { %413 = vmatpush.msra.mxu1 %v2003_v37  ;;  %432 = vmatpush.msra.mxu2 %v2028_v45 }
  0x3b   :  { %510 = vmatpush.msrb.mxu3 %v1791_v52  ;;  %529 = vmatpush.msrb.mxu0 %v1993_v35 }
  0x3c   :  { %414 = vmatpush.msra.mxu1 %v2023_v44  ;;  %433 = vmatpush.msra.mxu2 %v2040_v48 }
  0x3d   :  { %511 = vmatpush.msrb.mxu3 %v1807_v56  ;;  %530 = vmatpush.msrb.mxu0 %v2003_v37 }
  0x3e   :  { %415 = vmatpush.msra.mxu1 %v2033_v47  ;;  %434 = vmatpush.msra.mxu2 %v2058_v55 }
  0x3f   :  { %512 = vmatpush.msrb.mxu3 %v1822_v60  ;;  %531 = vmatpush.msrb.mxu0 %v2023_v44 }
  0x40   :  { %416 = vmatpush.msra.mxu1 %v2053_v54  ;;  %435 = vmatpush.msra.mxu2 %v2070_v58 }
  0x41   :  { %513 = vmatpush.msrb.mxu3 %v1838_v0  ;;  %532 = vmatpush.msrb.mxu0 %v2033_v47 }
  0x42   :  { %417 = vmatpush.msra.mxu1 %v2063_v57  ;;  %436 = vmatpush.msra.mxu2 %v2089_v3 }
  0x43   :  { %514 = vmatpush.msrb.mxu3 %v1853_v4  ;;  %533 = vmatpush.msrb.mxu0 %v2053_v54 }
  0x44   :  { %418 = vmatpush.msra.mxu1 %v2084_v2  ;;  %437 = vmatpush.msra.mxu2 %v2094_v5 }
  0x45   :  { %515 = vmatpush.msrb.mxu3 %v1868_v8  ;;  %534 = vmatpush.msrb.mxu0 %v2063_v57 }
  0x46   :  { %419 = vmatpush.msra.mxu1 %v2101_v6  ;;  %438 = vmatpush.msra.mxu2 %v2106_v7 }
  0x47   :  { %516 = vmatpush.msrb.mxu3 %v1879_v11  ;;  %535 = vmatpush.msrb.mxu0 %v2084_v2 }
  0x49   :  { %536 = vmatpush.msrb.mxu0 %v2101_v6 }
  0x4b   :  { %656 = vmatpush.msra.mxu0 %v1904_v16 }
  0x4d   :  { %657 = vmatpush.msra.mxu0 %v1920_v19 }
  0x4f   :  { %658 = vmatpush.msra.mxu0 %v1934_v21 }
  0x51   :  { %659 = vmatpush.msra.mxu0 %v1949_v24 }
  0x53   :  { %660 = vmatpush.msra.mxu0 %v1968_v28 }
  0x55   :  { %661 = vmatpush.msra.mxu0 %v1980_v30 }
  0x57   :  { %662 = vmatpush.msra.mxu0 %v1998_v36 }
  0x59   :  { %663 = vmatpush.msra.mxu0 %v2010_v39 }
  0x5b   :  { %664 = vmatpush.msra.mxu0 %v2028_v45 }
  0x5d   :  { %665 = vmatpush.msra.mxu0 %v2040_v48 }
  0x5f   :  { %666 = vmatpush.msra.mxu0 %v2058_v55 }
  0x61   :  { %667 = vmatpush.msra.mxu0 %v2070_v58 }
  0x63   :  { %668 = vmatpush.msra.mxu0 %v2089_v3 }
  0x65   :  { %669 = vmatpush.msra.mxu0 %v2094_v5 }
  0x67   :  { %670 = vmatpush.msra.mxu0 %v2106_v7 }
  0x82   :  { %v93_v32 = vpop.f32.mrf.mxu1 }
  0x83   :  { %v94_v33 = vadd.f32 %v1956_v25, %v93_v32 }
  0x85   :  { %v117_v34 = vmax.f32 %v94_v33, 0.0  ;;  %v2118_v33 = vld [vmem:[%s2876_s5 + $0x10] sm:$0xff] }
  0x86   :  { %2903 = vst [vmem:[#allocation11_spill] sm:$0xff] %v2118_v33  ;;  %439 = vmatpush.msra.mxu2 %v2118_v33  ;;  %671 = vmatpush.msra.mxu0 %v2118_v33 }
  0x87   :  { %197 = vmatmul.f32.vlgmr.msrb.gmra.mxu1 %v117_v34  ;;  %238 = vmatmul.f32.vlgmr.msrb.gmra.mxu2 %v117_v34 }
  0x88   :  { %279 = vmatmul.f32.vlgmr.msra.gmra.mxu3 %v117_v34  ;;  %v105_v53 = vpop.f32.mrf.mxu2  ;;  %541 = vmatpush.msrb.mxu1 %v1904_v16 }
  0x89   :  { %636 = vmatpush.msra.mxu3 %v1874_v9  ;;  %v106_v63 = vadd.f32 %v1956_v25, %v105_v53  ;;  %616 = vmatpush.msrb.mxu2 %v1634_v10 }
  0x8a   :  { %v96_v40 = vpop.f32.mrf.mxu1  ;;  %542 = vmatpush.msrb.mxu1 %v1920_v19 }
  0x8b   :  { %v97_v41 = vadd.f32 %v1956_v25, %v96_v40  ;;  %637 = vmatpush.msra.mxu3 %v1891_v14  ;;  %v121_v32 = vmax.f32 %v106_v63, 0.0  ;;  %617 = vmatpush.msrb.mxu2 %v1646_v13 }
  0x8c   :  { %543 = vmatpush.msrb.mxu1 %v1934_v21 }
  0x8d   :  { %v118_v43 = vmax.f32 %v97_v41, 0.0  ;;  %638 = vmatpush.msra.mxu3 %v1899_v15  ;;  %618 = vmatpush.msrb.mxu2 %v1661_v17 }
  0x8e   :  { %544 = vmatpush.msrb.mxu1 %v1949_v24 }
  0x8f   :  { %200 = vmatmul.f32.gmra.mxu1 %v118_v43  ;;  %241 = vmatmul.f32.gmra.mxu2 %v118_v43 }
  0x90   :  { %282 = vmatmul.f32.gmra.mxu3 %v118_v43  ;;  %v108_v1 = vpop.f32.mrf.mxu2  ;;  %545 = vmatpush.msrb.mxu1 %v1968_v28 }
  0x91   :  { %639 = vmatpush.msra.mxu3 %v1915_v18  ;;  %v109_v34 = vadd.f32 %v1956_v25, %v108_v1  ;;  %619 = vmatpush.msrb.mxu2 %v1682_v23 }
  0x92   :  { %v99_v49 = vpop.f32.mrf.mxu1  ;;  %546 = vmatpush.msrb.mxu1 %v1980_v30 }
  0x93   :  { %v100_v50 = vadd.f32 %v1956_v25, %v99_v49  ;;  %640 = vmatpush.msra.mxu3 %v1929_v20  ;;  %v122_v41 = vmax.f32 %v109_v34, 0.0  ;;  %620 = vmatpush.msrb.mxu2 %v1698_v27 }
  0x94   :  { %547 = vmatpush.msrb.mxu1 %v1998_v36 }
  0x95   :  { %v119_v51 = vmax.f32 %v100_v50, 0.0  ;;  %641 = vmatpush.msra.mxu3 %v1944_v22  ;;  %621 = vmatpush.msrb.mxu2 %v1713_v31 }
  0x96   :  { %548 = vmatpush.msrb.mxu1 %v2010_v39 }
  0x97   :  { %203 = vmatmul.f32.gmra.mxu1 %v119_v51  ;;  %244 = vmatmul.f32.gmra.mxu2 %v119_v51 }
  0x98   :  { %285 = vmatmul.f32.gmra.mxu3 %v119_v51  ;;  %v111_v40 = vpop.f32.mrf.mxu2  ;;  %549 = vmatpush.msrb.mxu1 %v2028_v45 }
  0x99   :  { %642 = vmatpush.msra.mxu3 %v1963_v26  ;;  %v112_v43 = vadd.f32 %v1956_v25, %v111_v40  ;;  %622 = vmatpush.msrb.mxu2 %v1738_v38 }
  0x9a   :  { %v102_v59 = vpop.f32.mrf.mxu1  ;;  %550 = vmatpush.msrb.mxu1 %v2040_v48 }
  0x9b   :  { %v103_v61 = vadd.f32 %v1956_v25, %v102_v59  ;;  %643 = vmatpush.msra.mxu3 %v1973_v29  ;;  %v123_v49 = vmax.f32 %v112_v43, 0.0  ;;  %623 = vmatpush.msrb.mxu2 %v1754_v42 }
  0x9c   :  { %551 = vmatpush.msrb.mxu1 %v2058_v55 }
  0x9d   :  { %v120_v62 = vmax.f32 %v103_v61, 0.0  ;;  %644 = vmatpush.msra.mxu3 %v1993_v35  ;;  %624 = vmatpush.msrb.mxu2 %v1769_v46 }
  0x9e   :  { %552 = vmatpush.msrb.mxu1 %v2070_v58 }
  0x9f   :  { %206 = vmatmul.f32.gmra.mxu1 %v120_v62  ;;  %247 = vmatmul.f32.gmra.mxu2 %v120_v62 }
  0xa0   :  { %288 = vmatmul.f32.gmra.mxu3 %v120_v62  ;;  %v114_v50 = vpop.f32.mrf.mxu2  ;;  %553 = vmatpush.msrb.mxu1 %v2089_v3 }
  0xa1   :  { %645 = vmatpush.msra.mxu3 %v2003_v37  ;;  %v115_v51 = vadd.f32 %v1956_v25, %v114_v50  ;;  %625 = vmatpush.msrb.mxu2 %v1791_v52  ;;  %v173_v25 = vld [vmem:[%s2879_s4] sm:$0x7] }
  0xa2   :  { %554 = vmatpush.msrb.mxu1 %v2094_v5  ;;  %v175_v61 = vperm.slane %v173_v25, 0  ;;  %v2220_v34 = vperm.slane %v173_v25, 2 }
  0xa3   :  { %646 = vmatpush.msra.mxu3 %v2023_v44  ;;  %v124_v53 = vmax.f32 %v115_v51, 0.0  ;;  %626 = vmatpush.msrb.mxu2 %v1807_v56 }
  0xa4   :  { %555 = vmatpush.msrb.mxu1 %v2106_v7 }
  0xa5   :  { %647 = vmatpush.msra.mxu3 %v2033_v47  ;;  %627 = vmatpush.msrb.mxu2 %v1822_v60 }
  0xa6   :  { %556 = vmatpush.msrb.mxu1 %v2118_v33 }
  0xa7   :  { %209 = vmatmul.f32.gmra.mxu1 %v121_v32  ;;  %250 = vmatmul.f32.gmra.mxu2 %v121_v32 }
  0xa8   :  { %291 = vmatmul.f32.gmra.mxu3 %v121_v32  ;;  %628 = vmatpush.msrb.mxu2 %v1838_v0  ;;  %v176_v32 = vperm.slane %v173_v25, 1 }
  0xa9   :  { %648 = vmatpush.msra.mxu3 %v2053_v54 }
  0xaa   :  { %629 = vmatpush.msrb.mxu2 %v1853_v4 }
  0xab   :  { %649 = vmatpush.msra.mxu3 %v2063_v57 }
  0xac   :  { %630 = vmatpush.msrb.mxu2 %v1868_v8 }
  0xad   :  { %650 = vmatpush.msra.mxu3 %v2084_v2 }
  0xae   :  { %631 = vmatpush.msrb.mxu2 %v1879_v11 }
  0xaf   :  { %212 = vmatmul.f32.gmra.mxu1 %v122_v41  ;;  %253 = vmatmul.f32.gmra.mxu2 %v122_v41 }
  0xb0   :  { %294 = vmatmul.f32.gmra.mxu3 %v122_v41 }
  0xb1   :  { %651 = vmatpush.msra.mxu3 %v2101_v6 }
  0xb7   :  { %215 = vmatmul.f32.gmra.mxu1 %v123_v49  ;;  %256 = vmatmul.f32.gmra.mxu2 %v123_v49 }
  0xb8   :  { %297 = vmatmul.f32.gmra.mxu3 %v123_v49 }
  0xbf   :  { %218 = vmatmul.f32.gmra.mxu1 %v124_v53  ;;  %259 = vmatmul.f32.gmra.mxu2 %v124_v53 }
  0xc0   :  { %300 = vmatmul.f32.gmra.mxu3 %v124_v53 }
  0xc7   :  { %420 = vmatmul.f32.vlgmr.msra.gmra.mxu1 %v1548_v12  ;;  %440 = vmatmul.f32.vlgmr.msra.gmra.mxu2 %v1548_v12 }
  0xc8   :  { %731 = vmatpush.msra.mxu1 %v1634_v10  ;;  %751 = vmatpush.msra.mxu2 %v1874_v9 }
  0xca   :  { %732 = vmatpush.msra.mxu1 %v1646_v13  ;;  %752 = vmatpush.msra.mxu2 %v1891_v14 }
  0xcc   :  { %733 = vmatpush.msra.mxu1 %v1661_v17  ;;  %753 = vmatpush.msra.mxu2 %v1899_v15 }
  0xce   :  { %734 = vmatpush.msra.mxu1 %v1682_v23  ;;  %754 = vmatpush.msra.mxu2 %v1915_v18 }
  0xd0   :  { %735 = vmatpush.msra.mxu1 %v1698_v27  ;;  %755 = vmatpush.msra.mxu2 %v1929_v20 }
  0xd2   :  { %736 = vmatpush.msra.mxu1 %v1713_v31  ;;  %756 = vmatpush.msra.mxu2 %v1944_v22 }
  0xd4   :  { %737 = vmatpush.msra.mxu1 %v1738_v38  ;;  %757 = vmatpush.msra.mxu2 %v1963_v26 }
  0xd6   :  { %738 = vmatpush.msra.mxu1 %v1754_v42  ;;  %758 = vmatpush.msra.mxu2 %v1973_v29 }
  0xd8   :  { %739 = vmatpush.msra.mxu1 %v1769_v46  ;;  %759 = vmatpush.msra.mxu2 %v1993_v35 }
  0xda   :  { %740 = vmatpush.msra.mxu1 %v1791_v52  ;;  %760 = vmatpush.msra.mxu2 %v2003_v37 }
  0xdc   :  { %741 = vmatpush.msra.mxu1 %v1807_v56  ;;  %761 = vmatpush.msra.mxu2 %v2023_v44 }
  0xde   :  { %742 = vmatpush.msra.mxu1 %v1822_v60  ;;  %762 = vmatpush.msra.mxu2 %v2033_v47 }
  0xe0   :  { %743 = vmatpush.msra.mxu1 %v1838_v0  ;;  %763 = vmatpush.msra.mxu2 %v2053_v54 }
  0xe2   :  { %744 = vmatpush.msra.mxu1 %v1853_v4  ;;  %764 = vmatpush.msra.mxu2 %v2063_v57 }
  0xe4   :  { %745 = vmatpush.msra.mxu1 %v1868_v8  ;;  %765 = vmatpush.msra.mxu2 %v2084_v2 }
  0xe6   :  { %746 = vmatpush.msra.mxu1 %v1879_v11  ;;  %766 = vmatpush.msra.mxu2 %v2101_v6  ;;  %v401_v11 = vpop.f32.mrf.mxu0 }
 0x104   :  { %v198_v12 = vpop.f32.mrf.mxu1 }
 0x105   :  { %v199_v53 = vadd.f32 %v198_v12, %v175_v61 }
 0x10a   :  { %v239_v59 = vpop.f32.mrf.mxu2 }
 0x10b   :  { %v2216_v62 = vpop.f32.mrf.mxu3 }
 0x10c   :  { %v201_v63 = vpop.f32.mrf.mxu1 }
 0x10d   :  { %v2218_v1 = vadd.f32 %v201_v63, %v175_v61 }
 0x10f   :  { %2904 = vst [vmem:[#allocation12_spill] sm:$0xff] %v2218_v1 }
 0x112   :  { %v242_v40 = vpop.f32.mrf.mxu2 }
 0x113   :  { %v2222_v41 = vadd.f32 %v242_v40, %v176_v32  ;;  %v283_v43 = vpop.f32.mrf.mxu3  ;;  %v444_v40 = vadd.f32 %v401_v11, %v199_v53 }
 0x114   :  { %v2225_v49 = vadd.f32 %v283_v43, %v2220_v34  ;;  %v204_v50 = vpop.f32.mrf.mxu1 }
 0x115   :  { %2905 = vst [vmem:[#allocation13_spill] sm:$0xff] %v2222_v41  ;;  %v2227_v51 = vadd.f32 %v204_v50, %v175_v61  ;;  %v1397_v41 = vmul.f32 -1.442695, %v444_v40 }
 0x116   :  { %2906 = vst [vmem:[#allocation14_spill] sm:$0xff] %v2225_v49 }
 0x117   :  { %2907 = vst [vmem:[#allocation15_spill] sm:$0xff] %v2227_v51  ;;  %1419 = vpow2.f32 %v1397_v41 }
 0x11a   :  { %v245_v6 = vpop.f32.mrf.mxu2 }
 0x11b   :  { %v2229_v33 = vadd.f32 %v245_v6, %v176_v32  ;;  %v286_v63 = vpop.f32.mrf.mxu3 }
 0x11c   :  { %v2232_v1 = vadd.f32 %v286_v63, %v2220_v34  ;;  %v207_v25 = vpop.f32.mrf.mxu1 }
 0x11d   :  { %2908 = vst [vmem:[#allocation16_spill] sm:$0xff] %v2229_v33  ;;  %v2234_v2 = vadd.f32 %v207_v25, %v175_v61 }
 0x11e   :  { %2909 = vst [vmem:[#allocation17_spill] sm:$0xff] %v2232_v1  ;;  %v1420_v1 = vpop.eup %1419 }
 0x11f   :  { %2910 = vst [vmem:[#allocation18_spill] sm:$0xff] %v2234_v2  ;;  %v240_v2 = vadd.f32 %v239_v59, %v176_v32 }
 0x122   :  { %v248_v8 = vpop.f32.mrf.mxu2 }
 0x123   :  { %v2236_v43 = vadd.f32 %v248_v8, %v176_v32  ;;  %v289_v49 = vpop.f32.mrf.mxu3  ;;  %v448_v8 = vadd.f32 1.0, %v1420_v1 }
 0x124   :  { %v2239_v50 = vadd.f32 %v289_v49, %v2220_v34  ;;  %v210_v12 = vpop.f32.mrf.mxu1 }
 0x125   :  { %2911 = vst [vmem:[#allocation19_spill] sm:$0xff] %v2236_v43  ;;  %v2241_v51 = vadd.f32 %v210_v12, %v175_v61  ;;  %1421 = vrcp.f32 %v448_v8  ;;  %vm454_vm2 = vweird.f32 %v448_v8 }
 0x126   :  { %2912 = vst [vmem:[#allocation20_spill] sm:$0xff] %v2239_v50 }
 0x127   :  { %2913 = vst [vmem:[#allocation21_spill] sm:$0xff] %v2241_v51 }
 0x12a   :  { %v251_v6 = vpop.f32.mrf.mxu2 }
 0x12b   :  { %v2243_v33 = vadd.f32 %v251_v6, %v176_v32  ;;  %v292_v63 = vpop.f32.mrf.mxu3 }
 0x12c   :  { %v2246_v25 = vadd.f32 %v292_v63, %v2220_v34  ;;  %v213_v11 = vpop.f32.mrf.mxu1 }
 0x12d   :  { %2914 = vst [vmem:[#allocation22_spill] sm:$0xff] %v2243_v33  ;;  %v2248_v53 = vadd.f32 %v213_v11, %v175_v61  ;;  %v1422_v33 = vpop.eup %1421 }
 0x12e   :  { %2915 = vst [vmem:[#allocation23_spill] sm:$0xff] %v2246_v25  ;;  %vm455_vm1 = vweird.f32 %v1422_v33 }
 0x12f   :  { %2916 = vst [vmem:[#allocation24_spill] sm:$0xff] %v2248_v53  ;;  %v450_v53 = vmul.f32 %v1422_v33, %v448_v8  ;;  %vm456_vm3 = vmor %vm454_vm2, %vm455_vm1 }
 0x132   :  { %v254_v40 = vpop.f32.mrf.mxu2 }
 0x133   :  { %v2250_v49 = vadd.f32 %v254_v40, %v176_v32  ;;  %v295_v50 = vpop.f32.mrf.mxu3  ;;  %v451_v40 = vsub.f32 1.0, %v450_v53  ;;  %v458_v53 = vand.u32 2147483647, %v448_v8 }
 0x134   :  { %v2253_v12 = vadd.f32 %v295_v50, %v2220_v34  ;;  %v216_v41 = vpop.f32.mrf.mxu1 }
 0x135   :  { %2917 = vst [vmem:[#allocation25_spill] sm:$0xff] %v2250_v49  ;;  %v2255_v6 = vadd.f32 %v216_v41, %v175_v61  ;;  %v452_v41 = vmul.f32 %v1422_v33, %v451_v40  ;;  %vm459_vm4 = vcmp.eq.f32.partialorder %v458_v53, 8.507059e+37  ;;  %v281_v40 = vadd.f32 %v2216_v62, %v2220_v34 }
 0x136   :  { %2918 = vst [vmem:[#allocation26_spill] sm:$0xff] %v2253_v12 }
 0x137   :  { %2919 = vst [vmem:[#allocation27_spill] sm:$0xff] %v2255_v6  ;;  %v453_v57 = vadd.f32 %v1422_v33, %v452_v41 }
 0x139   :  { %v457_v59 = vsel %vm456_vm3, %v1422_v33, %v453_v57 }
 0x13a   :  { %v257_v51 = vpop.f32.mrf.mxu2 }
 0x13b   :  { %v2257_v43 = vadd.f32 %v257_v51, %v176_v32  ;;  %v298_v63 = vpop.f32.mrf.mxu3  ;;  %v2269_v51 = vld [vmem:[%s2878_s6] ss:$0 sm:$0xff] }
 0x13c   :  { %v2260_v11 = vadd.f32 %v298_v63, %v2220_v34  ;;  %v219_v1 = vpop.f32.mrf.mxu1  ;;  %v460_v63 = vand.u32 2147483648, %v448_v8 }
 0x13d   :  { %v2262_v25 = vadd.f32 %v219_v1, %v175_v61 }
 0x13e   :  { %2920 = vst [vmem:[#allocation28_spill] sm:$0xff] %v2260_v11 }
 0x13f   :  { %2921 = vst [vmem:[#allocation29_spill] sm:$0xff] %v2262_v25 }
 0x142   :  { %v260_v49 = vpop.f32.mrf.mxu2 }
 0x143   :  { %v2264_v50 = vadd.f32 %v260_v49, %v176_v32  ;;  %v461_v49 = vor.u32 1.1754944e-38, %v460_v63 }
 0x144   :  { %v421_v12 = vpop.f32.mrf.mxu1 }
 0x145   :  { %2922 = vst [vmem:[#allocation30_spill] sm:$0xff] %v2264_v50  ;;  %v464_v6 = vadd.f32 %v421_v12, %v240_v2  ;;  %v462_v12 = vsel %vm459_vm4, %v461_v49, %v457_v59 }
 0x147   :  { %v1398_v7 = vmul.f32 -1.442695, %v464_v6 }
 0x149   :  { %1423 = vpow2.f32 %v1398_v7 }
 0x14a   :  { %v441_v61 = vpop.f32.mrf.mxu2 }
 0x14b   :  { %v487_v32 = vadd.f32 %v2269_v51, %v441_v61 }
 0x14d   :  { %v488_v1 = vmul.f32 %v487_v32, %v462_v12 }
 0x14f   :  { %v1424_v2 = vpop.eup %1423  ;;  %v489_v41 = vadd.f32 %v488_v1, %v281_v40 }
 0x150   :  { %v468_v6 = vadd.f32 1.0, %v1424_v2 }
 0x152   :  { %1425 = vrcp.f32 %v468_v6  ;;  %v480_v8 = vand.u32 2147483648, %v468_v6  ;;  %v478_v57 = vand.u32 2147483647, %v468_v6  ;;  %vm474_vm6 = vweird.f32 %v468_v6 }
 0x153   :  { %1427 = vtanh.f32 %v489_v41 }
 0x154   :  { %v481_v61 = vor.u32 1.1754944e-38, %v480_v8  ;;  %vm479_vm8 = vcmp.eq.f32.partialorder %v478_v57, 8.507059e+37 }
 0x158   :  { %v1426_v7 = vpop.eup %1425 }
 0x159   :  { %v470_v50 = vmul.f32 %v1426_v7, %v468_v6  ;;  %vm475_vm5 = vweird.f32 %v1426_v7  ;;  %v1428_v33 = vpop.eup %1427 }
 0x15a   :  { %vm476_vm7 = vmor %vm474_vm6, %vm475_vm5  ;;  %v491_v53 = vsub.f32 0.0, %v1428_v33 }
 0x15b   :  { %v471_v25 = vsub.f32 1.0, %v470_v50 }
 0x15d   :  { %v472_v11 = vmul.f32 %v1426_v7, %v471_v25  ;;  %v2932_v25 = vld [vmem:[#allocation12_spill] sm:$0xff] }
 0x15f   :  { %v473_v63 = vadd.f32 %v1426_v7, %v472_v11 }
 0x161   :  { %v477_v59 = vsel %vm476_vm7, %v1426_v7, %v473_v63 }
 0x162   :  { %v482_v32 = vsel %vm479_vm8, %v481_v61, %v477_v59 }
 0x163   :  { %v492_v62 = vmul.f32 %v491_v53, %v482_v32 }
 0x165   :  { %v2274_v49 = vadd.f32 %v1428_v33, %v492_v62 }
 0x167   :  { %517 = vmatmul.f32.vlgmr.msrb.gmra.mxu3 %v2274_v49  ;;  %537 = vmatmul.f32.vlgmr.msrb.gmra.mxu0 %v2274_v49 }
 0x168   :  { %557 = vmatmul.f32.vlgmr.msrb.gmra.mxu1 %v2274_v49  ;;  %771 = vmatpush.msrb.mxu3 %v1904_v16 }
 0x169   :  { %846 = vmatpush.msrb.mxu0 %v1634_v10  ;;  %866 = vmatpush.msrb.mxu1 %v1874_v9  ;;  %v2923_v10 = vld [vmem:[#allocation7_spill] sm:$0xff] }
 0x16a   :  { %772 = vmatpush.msrb.mxu3 %v1920_v19 }
 0x16b   :  { %847 = vmatpush.msrb.mxu0 %v1646_v13  ;;  %867 = vmatpush.msrb.mxu1 %v1891_v14  ;;  %v2924_v13 = vld [vmem:[#allocation10_spill] sm:$0xff] }
 0x16c   :  { %773 = vmatpush.msrb.mxu3 %v1934_v21 }
 0x16d   :  { %848 = vmatpush.msrb.mxu0 %v1661_v17  ;;  %868 = vmatpush.msrb.mxu1 %v1899_v15  ;;  %v2925_v17 = vld [vmem:[#allocation5_spill] sm:$0xff] }
 0x16e   :  { %774 = vmatpush.msrb.mxu3 %v1949_v24 }
 0x16f   :  { %849 = vmatpush.msrb.mxu0 %v1682_v23  ;;  %869 = vmatpush.msrb.mxu1 %v1915_v18  ;;  %v2926_v23 = vld [vmem:[#allocation8_spill] sm:$0xff] }
 0x170   :  { %775 = vmatpush.msrb.mxu3 %v1968_v28 }
 0x171   :  { %850 = vmatpush.msrb.mxu0 %v1698_v27  ;;  %870 = vmatpush.msrb.mxu1 %v1929_v20  ;;  %v2927_v27 = vld [vmem:[#allocation11_spill] sm:$0xff] }
 0x172   :  { %776 = vmatpush.msrb.mxu3 %v1980_v30 }
 0x173   :  { %851 = vmatpush.msrb.mxu0 %v1713_v31  ;;  %871 = vmatpush.msrb.mxu1 %v1944_v22  ;;  %v2928_v31 = vld [vmem:[#allocation6_spill] sm:$0xff] }
 0x174   :  { %777 = vmatpush.msrb.mxu3 %v1998_v36 }
 0x175   :  { %852 = vmatpush.msrb.mxu0 %v1738_v38  ;;  %872 = vmatpush.msrb.mxu1 %v1963_v26  ;;  %v2929_v38 = vld [vmem:[#allocation9_spill] sm:$0xff] }
 0x176   :  { %778 = vmatpush.msrb.mxu3 %v2010_v39 }
 0x177   :  { %853 = vmatpush.msrb.mxu0 %v1754_v42  ;;  %873 = vmatpush.msrb.mxu1 %v1973_v29  ;;  %v2327_v42 = vpop.f32.mrf.mxu3 }
 0x178   :  { %779 = vmatpush.msrb.mxu3 %v2028_v45  ;;  %2930 = vst [vmem:[#allocation7_spill] sm:$0xff] %v2327_v42 }
 0x179   :  { %854 = vmatpush.msrb.mxu0 %v1769_v46  ;;  %874 = vmatpush.msrb.mxu1 %v1993_v35 }
 0x17a   :  { %780 = vmatpush.msrb.mxu3 %v2040_v48 }
 0x17b   :  { %855 = vmatpush.msrb.mxu0 %v1791_v52  ;;  %875 = vmatpush.msrb.mxu1 %v2003_v37  ;;  %v2931_v52 = vld [vmem:[#allocation13_spill] sm:$0xff] }
 0x17c   :  { %781 = vmatpush.msrb.mxu3 %v2058_v55 }
 0x17d   :  { %856 = vmatpush.msrb.mxu0 %v1807_v56  ;;  %876 = vmatpush.msrb.mxu1 %v2023_v44 }
 0x17e   :  { %782 = vmatpush.msrb.mxu3 %v2070_v58 }
 0x17f   :  { %857 = vmatpush.msrb.mxu0 %v1822_v60  ;;  %877 = vmatpush.msrb.mxu1 %v2033_v47 }
 0x180   :  { %783 = vmatpush.msrb.mxu3 %v2089_v3 }
 0x181   :  { %858 = vmatpush.msrb.mxu0 %v1838_v0  ;;  %878 = vmatpush.msrb.mxu1 %v2053_v54 }
 0x182   :  { %784 = vmatpush.msrb.mxu3 %v2094_v5 }
 0x183   :  { %859 = vmatpush.msrb.mxu0 %v1853_v4  ;;  %879 = vmatpush.msrb.mxu1 %v2923_v10 }
 0x184   :  { %785 = vmatpush.msrb.mxu3 %v2924_v13 }
 0x185   :  { %860 = vmatpush.msrb.mxu0 %v2925_v17  ;;  %880 = vmatpush.msrb.mxu1 %v2926_v23 }
 0x186   :  { %786 = vmatpush.msrb.mxu3 %v2927_v27 }
 0x187   :  { %861 = vmatpush.msrb.mxu0 %v2928_v31  ;;  %881 = vmatpush.msrb.mxu1 %v2929_v38 }
 0x1e4   :  { %v538_v46 = vpop.f32.mrf.mxu0 }
 0x1e5   :  { %v581_v56 = vadd.f32 %v538_v46, %v2931_v52  ;;  %v558_v53 = vpop.f32.mrf.mxu1 }
 0x1e6   :  { %v601_v46 = vadd.f32 %v2269_v51, %v558_v53 }
 0x1e7   :  { %v1400_v60 = vmul.f32 -1.442695, %v581_v56 }
 0x1e9   :  { %1429 = vpow2.f32 %v1400_v60 }
 0x1ea   :  { %v518_v0 = vpop.f32.mrf.mxu3 }
 0x1eb   :  { %v561_v11 = vadd.f32 %v518_v0, %v2932_v25  ;;  %v2933_v25 = vld [vmem:[#allocation14_spill] sm:$0xff] }
 0x1ed   :  { %v1399_v50 = vmul.f32 -1.442695, %v561_v11 }
 0x1ef   :  { %1431 = vpow2.f32 %v1399_v50  ;;  %v1430_v2 = vpop.eup %1429 }
 0x1f0   :  { %v585_v6 = vadd.f32 1.0, %v1430_v2 }
 0x1f2   :  { %v597_v2 = vand.u32 2147483648, %v585_v6  ;;  %vm591_vm14 = vweird.f32 %v585_v6 }
 0x1f5   :  { %v1432_v12 = vpop.eup %1431 }
 0x1f6   :  { %v565_v1 = vadd.f32 1.0, %v1432_v12  ;;  %v595_v12 = vand.u32 2147483647, %v585_v6 }
 0x1f8   :  { %1433 = vrcp.f32 %v565_v1  ;;  %v577_v33 = vand.u32 2147483648, %v565_v1  ;;  %v575_v61 = vand.u32 2147483647, %v565_v1  ;;  %vm571_vm10 = vweird.f32 %v565_v1 }
 0x1f9   :  { %1435 = vrcp.f32 %v585_v6  ;;  %vm596_vm0 = vcmp.eq.f32.partialorder %v595_v12, 8.507059e+37 }
 0x1fa   :  { %v578_v62 = vor.u32 1.1754944e-38, %v577_v33  ;;  %vm576_vm12 = vcmp.eq.f32.partialorder %v575_v61, 8.507059e+37 }
 0x1fe   :  { %v1434_v40 = vpop.eup %1433 }
 0x1ff   :  { %v1436_v41 = vpop.eup %1435  ;;  %v567_v7 = vmul.f32 %v1434_v40, %v565_v1  ;;  %vm572_vm9 = vweird.f32 %v1434_v40 }
 0x200   :  { %v587_v57 = vmul.f32 %v1436_v41, %v585_v6  ;;  %vm573_vm11 = vmor %vm571_vm10, %vm572_vm9  ;;  %vm592_vm13 = vweird.f32 %v1436_v41  ;;  %v2343_v6 = vld [vmem:[%s2876_s5 + $0x168] sm:$0xff] }
 0x201   :  { %v568_v8 = vsub.f32 1.0, %v567_v7  ;;  %vm593_vm15 = vmor %vm591_vm14, %vm592_vm13 }
 0x202   :  { %v588_v32 = vsub.f32 1.0, %v587_v57 }
 0x203   :  { %v569_v63 = vmul.f32 %v1434_v40, %v568_v8  ;;  %v598_v8 = vor.u32 1.1754944e-38, %v597_v2 }
 0x204   :  { %v589_v0 = vmul.f32 %v1436_v41, %v588_v32 }
 0x205   :  { %v570_v59 = vadd.f32 %v1434_v40, %v569_v63 }
 0x206   :  { %v590_v50 = vadd.f32 %v1436_v41, %v589_v0 }
 0x207   :  { %v574_v52 = vsel %vm573_vm11, %v1434_v40, %v570_v59 }
 0x208   :  { %v579_v56 = vsel %vm576_vm12, %v578_v62, %v574_v52  ;;  %v594_v1 = vsel %vm593_vm15, %v1436_v41, %v590_v50  ;;  %v2351_v41 = vld [vmem:[%s2876_s5 + $0x150] sm:$0xff] }
 0x209   :  { %v602_v60 = vmul.f32 %v601_v46, %v579_v56  ;;  %v599_v40 = vsel %vm596_vm0, %v598_v8, %v594_v1  ;;  %v2936_v8 = vld [vmem:[#allocation17_spill] sm:$0xff] }
 0x20b   :  { %v603_v11 = vadd.f32 %v602_v60, %v2933_v25 }
 0x20d   :  { %1437 = vtanh.f32 %v603_v11 }
 0x213   :  { %v1438_v7 = vpop.eup %1437 }
 0x214   :  { %v605_v57 = vsub.f32 %v2274_v49, %v1438_v7 }
 0x216   :  { %v606_v33 = vmul.f32 %v605_v57, %v599_v40 }
 0x218   :  { %v2334_v63 = vadd.f32 %v1438_v7, %v606_v33 }
 0x21a   :  { %632 = vmatmul.f32.vlgmr.msrb.gmra.mxu2 %v2334_v63  ;;  %652 = vmatmul.f32.vlgmr.msra.gmra.mxu3 %v2334_v63 }
 0x21b   :  { %672 = vmatmul.f32.vlgmr.msra.gmra.mxu0 %v2334_v63  ;;  %886 = vmatpush.msrb.mxu2 %v1904_v16  ;;  %v2359_v16 = vld [vmem:[%s2876_s5 + $0x138] sm:$0xff] }
 0x21c   :  { %961 = vmatpush.msra.mxu3 %v2343_v6  ;;  %981 = vmatpush.msra.mxu0 %v1874_v9  ;;  %v2367_v9 = vld [vmem:[%s2876_s5 + $0x120] sm:$0xff] }
 0x21d   :  { %887 = vmatpush.msrb.mxu2 %v1920_v19  ;;  %v2399_v19 = vld [vmem:[%s2876_s5 + $0xc0] sm:$0xff] }
 0x21e   :  { %962 = vmatpush.msra.mxu3 %v2351_v41  ;;  %982 = vmatpush.msra.mxu0 %v1891_v14  ;;  %v2375_v14 = vld [vmem:[%s2876_s5 + $0x108] sm:$0xff] }
 0x21f   :  { %888 = vmatpush.msrb.mxu2 %v1934_v21  ;;  %v2415_v21 = vld [vmem:[%s2876_s5 + $0x90] sm:$0xff] }
 0x220   :  { %963 = vmatpush.msra.mxu3 %v2359_v16  ;;  %983 = vmatpush.msra.mxu0 %v1899_v15  ;;  %v2383_v15 = vld [vmem:[%s2876_s5 + $0xf0] sm:$0xff] }
 0x221   :  { %889 = vmatpush.msrb.mxu2 %v1949_v24  ;;  %v2431_v24 = vld [vmem:[%s2876_s5 + $0x60] sm:$0xff] }
 0x222   :  { %964 = vmatpush.msra.mxu3 %v2367_v9  ;;  %984 = vmatpush.msra.mxu0 %v1915_v18  ;;  %v2391_v18 = vld [vmem:[%s2876_s5 + $0xd8] sm:$0xff] }
 0x223   :  { %890 = vmatpush.msrb.mxu2 %v1968_v28 }
 0x224   :  { %965 = vmatpush.msra.mxu3 %v2375_v14  ;;  %985 = vmatpush.msra.mxu0 %v1929_v20  ;;  %v2407_v20 = vld [vmem:[%s2876_s5 + $0xa8] sm:$0xff] }
 0x225   :  { %891 = vmatpush.msrb.mxu2 %v1980_v30  ;;  %v2934_v30 = vld [vmem:[#allocation15_spill] sm:$0xff] }
 0x226   :  { %966 = vmatpush.msra.mxu3 %v2383_v15  ;;  %986 = vmatpush.msra.mxu0 %v1944_v22  ;;  %v2423_v22 = vld [vmem:[%s2876_s5 + $0x78] sm:$0xff] }
 0x227   :  { %892 = vmatpush.msrb.mxu2 %v1998_v36  ;;  %v2935_v36 = vld [vmem:[#allocation16_spill] sm:$0xff] }
 0x228   :  { %967 = vmatpush.msra.mxu3 %v2391_v18  ;;  %987 = vmatpush.msra.mxu0 %v1963_v26  ;;  %v2439_v26 = vld [vmem:[%s2876_s5 + $0x48] sm:$0xff] }
 0x229   :  { %893 = vmatpush.msrb.mxu2 %v2010_v39 }
 0x22a   :  { %968 = vmatpush.msra.mxu3 %v2399_v19  ;;  %988 = vmatpush.msra.mxu0 %v1973_v29 }
 0x22b   :  { %894 = vmatpush.msrb.mxu2 %v2028_v45 }
 0x22c   :  { %969 = vmatpush.msra.mxu3 %v2407_v20  ;;  %989 = vmatpush.msra.mxu0 %v1993_v35 }
 0x22d   :  { %895 = vmatpush.msrb.mxu2 %v2040_v48 }
 0x22e   :  { %970 = vmatpush.msra.mxu3 %v2415_v21  ;;  %990 = vmatpush.msra.mxu0 %v2003_v37 }
 0x22f   :  { %896 = vmatpush.msrb.mxu2 %v2058_v55 }
 0x230   :  { %971 = vmatpush.msra.mxu3 %v2423_v22  ;;  %991 = vmatpush.msra.mxu0 %v2023_v44 }
 0x231   :  { %897 = vmatpush.msrb.mxu2 %v2070_v58 }
 0x232   :  { %972 = vmatpush.msra.mxu3 %v2431_v24  ;;  %992 = vmatpush.msra.mxu0 %v2033_v47 }
 0x233   :  { %898 = vmatpush.msrb.mxu2 %v2089_v3 }
 0x234   :  { %973 = vmatpush.msra.mxu3 %v2439_v26  ;;  %993 = vmatpush.msra.mxu0 %v2053_v54 }
 0x235   :  { %899 = vmatpush.msrb.mxu2 %v2094_v5 }
 0x236   :  { %974 = vmatpush.msra.mxu3 %v1853_v4  ;;  %994 = vmatpush.msra.mxu0 %v2923_v10 }
 0x237   :  { %900 = vmatpush.msrb.mxu2 %v2924_v13 }
 0x238   :  { %975 = vmatpush.msra.mxu3 %v2925_v17  ;;  %995 = vmatpush.msra.mxu0 %v2926_v23 }
 0x239   :  { %901 = vmatpush.msrb.mxu2 %v2927_v27 }
 0x23a   :  { %976 = vmatpush.msra.mxu3 %v2928_v31  ;;  %996 = vmatpush.msra.mxu0 %v2929_v38 }
 0x298   :  { %v673_v60 = vpop.f32.mrf.mxu0 }
 0x299   :  { %v716_v50 = vadd.f32 %v2269_v51, %v673_v60  ;;  %v2543_v60 = vld [vmem:[%s2876_s5 + $0xe8] sm:$0xff] }
 0x29d   :  { %v633_v28 = vpop.f32.mrf.mxu2  ;;  %v653_v29 = vpop.f32.mrf.mxu3 }
 0x29e   :  { %v676_v35 = vadd.f32 %v633_v28, %v2934_v30  ;;  %v696_v4 = vadd.f32 %v653_v29, %v2935_v36 }
 0x2a0   :  { %v1401_v37 = vmul.f32 -1.442695, %v676_v35  ;;  %v1402_v39 = vmul.f32 -1.442695, %v696_v4 }
 0x2a2   :  { %1439 = vpow2.f32 %v1401_v37 }
 0x2a3   :  { %1441 = vpow2.f32 %v1402_v39 }
 0x2a8   :  { %v1440_v44 = vpop.eup %1439 }
 0x2a9   :  { %v1442_v47 = vpop.eup %1441  ;;  %v680_v17 = vadd.f32 1.0, %v1440_v44  ;;  %v2465_v44 = vld [vmem:[%s2876_s5 + $0x178] sm:$0xff] }
 0x2aa   :  { %v700_v61 = vadd.f32 1.0, %v1442_v47  ;;  %v2472_v47 = vld [vmem:[%s2876_s5 + $0x170] sm:$0xff] }
 0x2ab   :  { %1443 = vrcp.f32 %v680_v17  ;;  %v692_v62 = vand.u32 2147483648, %v680_v17  ;;  %v690_v56 = vand.u32 2147483647, %v680_v17  ;;  %vm686_vm2 = vweird.f32 %v680_v17 }
 0x2ac   :  { %1445 = vrcp.f32 %v700_v61  ;;  %v712_v33 = vand.u32 2147483648, %v700_v61  ;;  %vm706_vm6 = vweird.f32 %v700_v61  ;;  %v710_v28 = vand.u32 2147483647, %v700_v61 }
 0x2ad   :  { %v693_v25 = vor.u32 1.1754944e-38, %v692_v62  ;;  %vm691_vm4 = vcmp.eq.f32.partialorder %v690_v56, 8.507059e+37  ;;  %v2517_v62 = vld [vmem:[%s2876_s5 + $0x118] sm:$0xff] }
 0x2ae   :  { %v713_v35 = vor.u32 1.1754944e-38, %v712_v33  ;;  %vm711_vm8 = vcmp.eq.f32.partialorder %v710_v28, 8.507059e+37  ;;  %v2537_v56 = vld [vmem:[%s2876_s5 + $0xf8] sm:$0xff] }
 0x2b1   :  { %v1444_v53 = vpop.eup %1443 }
 0x2b2   :  { %v1446_v31 = vpop.eup %1445  ;;  %v682_v59 = vmul.f32 %v1444_v53, %v680_v17  ;;  %vm687_vm1 = vweird.f32 %v1444_v53  ;;  %v2478_v17 = vld [vmem:[%s2876_s5 + $0x160] sm:$0xff] }
 0x2b3   :  { %v702_v46 = vmul.f32 %v1446_v31, %v700_v61  ;;  %vm688_vm3 = vmor %vm686_vm2, %vm687_vm1  ;;  %vm707_vm5 = vweird.f32 %v1446_v31  ;;  %v2485_v61 = vld [vmem:[%s2876_s5 + $0x158] sm:$0xff] }
 0x2b4   :  { %v683_v32 = vsub.f32 1.0, %v682_v59  ;;  %vm708_vm7 = vmor %vm706_vm6, %vm707_vm5  ;;  %v2504_v59 = vld [vmem:[%s2876_s5 + $0x130] sm:$0xff] }
 0x2b5   :  { %v703_v11 = vsub.f32 1.0, %v702_v46  ;;  %v2524_v46 = vld [vmem:[%s2876_s5 + $0x110] sm:$0xff] }
 0x2b6   :  { %v684_v52 = vmul.f32 %v1444_v53, %v683_v32  ;;  %v2511_v32 = vld [vmem:[%s2876_s5 + $0x128] sm:$0xff] }
 0x2b7   :  { %v704_v7 = vmul.f32 %v1446_v31, %v703_v11  ;;  %v2563_v11 = vld [vmem:[%s2876_s5 + $0xc8] sm:$0xff] }
 0x2b8   :  { %v685_v0 = vadd.f32 %v1444_v53, %v684_v52  ;;  %v2530_v52 = vld [vmem:[%s2876_s5 + $0x100] sm:$0xff] }
 0x2b9   :  { %v705_v40 = vadd.f32 %v1446_v31, %v704_v7 }
 0x2ba   :  { %v689_v2 = vsel %vm688_vm3, %v1444_v53, %v685_v0  ;;  %v2491_v53 = vld [vmem:[%s2876_s5 + $0x148] sm:$0xff]  ;;  %v2550_v0 = vld [vmem:[%s2876_s5 + $0xe0] sm:$0xff] }
 0x2bb   :  { %v694_v12 = vsel %vm691_vm4, %v693_v25, %v689_v2  ;;  %v709_v29 = vsel %vm708_vm7, %v1446_v31, %v705_v40  ;;  %v2498_v31 = vld [vmem:[%s2876_s5 + $0x140] sm:$0xff]  ;;  %v2556_v25 = vld [vmem:[%s2876_s5 + $0xd0] sm:$0xff]  ;;  %v2579_v2 = vld [vmem:[%s2876_s5 + $0x98] sm:$0xff] }
 0x2bc   :  { %v717_v1 = vmul.f32 %v716_v50, %v694_v12  ;;  %v714_v4 = vsel %vm711_vm8, %v713_v35, %v709_v29  ;;  %v2571_v50 = vld [vmem:[%s2876_s5 + $0xb0] sm:$0xff] }
 0x2be   :  { %v718_v57 = vadd.f32 %v717_v1, %v2936_v8  ;;  %v2938_v1 = vld [vmem:[#allocation19_spill] sm:$0xff] }
 0x2c0   :  { %1447 = vtanh.f32 %v718_v57 }
 0x2c6   :  { %v1448_v30 = vpop.eup %1447 }
 0x2c7   :  { %v720_v36 = vsub.f32 %v2334_v63, %v1448_v30 }
 0x2c9   :  { %v721_v37 = vmul.f32 %v720_v36, %v714_v4 }
 0x2cb   :  { %v2457_v39 = vadd.f32 %v1448_v30, %v721_v37 }
 0x2cd   :  { %747 = vmatmul.f32.vlgmr.msra.gmra.mxu1 %v2457_v39  ;;  %767 = vmatmul.f32.vlgmr.msra.gmra.mxu2 %v2457_v39 }
 0x2ce   :  { %787 = vmatmul.f32.vlgmr.msrb.gmra.mxu3 %v2457_v39  ;;  %1001 = vmatpush.msra.mxu1 %v2465_v44 }
 0x2cf   :  { %1076 = vmatpush.msra.mxu2 %v2343_v6  ;;  %1096 = vmatpush.msrb.mxu3 %v2472_v47 }
 0x2d0   :  { %1002 = vmatpush.msra.mxu1 %v2478_v17 }
 0x2d1   :  { %1077 = vmatpush.msra.mxu2 %v2351_v41  ;;  %1097 = vmatpush.msrb.mxu3 %v2485_v61 }
 0x2d2   :  { %1003 = vmatpush.msra.mxu1 %v2491_v53 }
 0x2d3   :  { %1078 = vmatpush.msra.mxu2 %v2359_v16  ;;  %1098 = vmatpush.msrb.mxu3 %v2498_v31 }
 0x2d4   :  { %1004 = vmatpush.msra.mxu1 %v2504_v59 }
 0x2d5   :  { %1079 = vmatpush.msra.mxu2 %v2367_v9  ;;  %1099 = vmatpush.msrb.mxu3 %v2511_v32 }
 0x2d6   :  { %1005 = vmatpush.msra.mxu1 %v2517_v62 }
 0x2d7   :  { %1080 = vmatpush.msra.mxu2 %v2375_v14  ;;  %1100 = vmatpush.msrb.mxu3 %v2524_v46 }
 0x2d8   :  { %1006 = vmatpush.msra.mxu1 %v2530_v52 }
 0x2d9   :  { %1081 = vmatpush.msra.mxu2 %v2383_v15  ;;  %1101 = vmatpush.msrb.mxu3 %v2537_v56 }
 0x2da   :  { %1007 = vmatpush.msra.mxu1 %v2543_v60 }
 0x2db   :  { %1082 = vmatpush.msra.mxu2 %v2391_v18  ;;  %1102 = vmatpush.msrb.mxu3 %v2550_v0 }
 0x2dc   :  { %1008 = vmatpush.msra.mxu1 %v2556_v25 }
 0x2dd   :  { %1083 = vmatpush.msra.mxu2 %v2399_v19  ;;  %1103 = vmatpush.msrb.mxu3 %v2563_v11 }
 0x2de   :  { %1009 = vmatpush.msra.mxu1 %v2028_v45  ;;  %v2587_v45 = vld [vmem:[%s2876_s5 + $0x80] sm:$0xff] }
 0x2df   :  { %1084 = vmatpush.msra.mxu2 %v2407_v20  ;;  %1104 = vmatpush.msrb.mxu3 %v2571_v50 }
 0x2e0   :  { %1010 = vmatpush.msra.mxu1 %v2040_v48  ;;  %v2595_v48 = vld [vmem:[%s2876_s5 + $0x68] sm:$0xff] }
 0x2e1   :  { %1085 = vmatpush.msra.mxu2 %v2415_v21  ;;  %1105 = vmatpush.msrb.mxu3 %v2579_v2 }
 0x2e2   :  { %1011 = vmatpush.msra.mxu1 %v2058_v55  ;;  %v2605_v55 = vld [vmem:[%s2876_s5 + $0x30] sm:$0xff] }
 0x2e3   :  { %1086 = vmatpush.msra.mxu2 %v2423_v22  ;;  %1106 = vmatpush.msrb.mxu3 %v2587_v45 }
 0x2e4   :  { %1012 = vmatpush.msra.mxu1 %v2070_v58  ;;  %v2613_v58 = vld [vmem:[%s2876_s5 + $0x18] sm:$0xff] }
 0x2e5   :  { %1087 = vmatpush.msra.mxu2 %v2431_v24  ;;  %1107 = vmatpush.msrb.mxu3 %v2595_v48 }
 0x2e6   :  { %1013 = vmatpush.msra.mxu1 %v2089_v3 }
 0x2e7   :  { %1088 = vmatpush.msra.mxu2 %v2439_v26  ;;  %1108 = vmatpush.msrb.mxu3 %v2053_v54  ;;  %v2621_v54 = vld [vmem:[%s2876_s5] sm:$0xff] }
 0x2e8   :  { %1014 = vmatpush.msra.mxu1 %v2094_v5  ;;  %v2937_v5 = vld [vmem:[#allocation18_spill] sm:$0xff] }
 0x2e9   :  { %1089 = vmatpush.msra.mxu2 %v2605_v55  ;;  %1109 = vmatpush.msrb.mxu3 %v2923_v10 }
 0x2ea   :  { %1015 = vmatpush.msra.mxu1 %v2924_v13 }
 0x2eb   :  { %1090 = vmatpush.msra.mxu2 %v2613_v58  ;;  %1110 = vmatpush.msrb.mxu3 %v2926_v23 }
 0x2ec   :  { %1016 = vmatpush.msra.mxu1 %v2927_v27 }
 0x2ed   :  { %1091 = vmatpush.msra.mxu2 %v2621_v54  ;;  %1111 = vmatpush.msrb.mxu3 %v2929_v38 }
 0x34a   :  { %v748_v3 = vpop.f32.mrf.mxu1 }
 0x34b   :  { %v791_v10 = vadd.f32 %v748_v3, %v2937_v5 }
 0x34d   :  { %v1403_v13 = vmul.f32 -1.442695, %v791_v10 }
 0x34f   :  { %1449 = vpow2.f32 %v1403_v13 }
 0x350   :  { %v768_v12 = vpop.f32.mrf.mxu2 }
 0x351   :  { %v811_v7 = vadd.f32 %v768_v12, %v2938_v1  ;;  %v788_v4 = vpop.f32.mrf.mxu3 }
 0x352   :  { %v831_v12 = vadd.f32 %v2269_v51, %v788_v4 }
 0x353   :  { %v1404_v23 = vmul.f32 -1.442695, %v811_v7 }
 0x355   :  { %v1450_v8 = vpop.eup %1449  ;;  %1451 = vpow2.f32 %v1404_v23 }
 0x356   :  { %v795_v27 = vadd.f32 1.0, %v1450_v8  ;;  %v2939_v8 = vld [vmem:[#allocation20_spill] sm:$0xff] }
 0x358   :  { %1453 = vrcp.f32 %v795_v27  ;;  %v807_v38 = vand.u32 2147483648, %v795_v27  ;;  %v805_v35 = vand.u32 2147483647, %v795_v27  ;;  %vm801_vm10 = vweird.f32 %v795_v27 }
 0x35a   :  { %v808_v5 = vor.u32 1.1754944e-38, %v807_v38  ;;  %vm806_vm12 = vcmp.eq.f32.partialorder %v805_v35, 8.507059e+37 }
 0x35b   :  { %v1452_v57 = vpop.eup %1451 }
 0x35c   :  { %v815_v40 = vadd.f32 1.0, %v1452_v57 }
 0x35e   :  { %v1454_v33 = vpop.eup %1453  ;;  %1455 = vrcp.f32 %v815_v40  ;;  %vm821_vm14 = vweird.f32 %v815_v40  ;;  %v825_v42 = vand.u32 2147483647, %v815_v40 }
 0x35f   :  { %v797_v28 = vmul.f32 %v1454_v33, %v795_v27  ;;  %vm802_vm9 = vweird.f32 %v1454_v33 }
 0x360   :  { %vm803_vm11 = vmor %vm801_vm10, %vm802_vm9  ;;  %vm826_vm0 = vcmp.eq.f32.partialorder %v825_v42, 8.507059e+37  ;;  %v2662_v42 = vld [vmem:[%s2876_s5 + $0xb8] sm:$0xff] }
 0x361   :  { %v798_v29 = vsub.f32 1.0, %v797_v28 }
 0x363   :  { %v799_v30 = vmul.f32 %v1454_v33, %v798_v29  ;;  %v827_v29 = vand.u32 2147483648, %v815_v40 }
 0x364   :  { %v1456_v36 = vpop.eup %1455 }
 0x365   :  { %v817_v37 = vmul.f32 %v1456_v36, %v815_v40  ;;  %v800_v3 = vadd.f32 %v1454_v33, %v799_v30  ;;  %vm822_vm13 = vweird.f32 %v1456_v36  ;;  %v828_v38 = vor.u32 1.1754944e-38, %v827_v29 }
 0x366   :  { %vm823_vm15 = vmor %vm821_vm14, %vm822_vm13 }
 0x367   :  { %v818_v10 = vsub.f32 1.0, %v817_v37  ;;  %v804_v13 = vsel %vm803_vm11, %v1454_v33, %v800_v3 }
 0x368   :  { %v809_v1 = vsel %vm806_vm12, %v808_v5, %v804_v13 }
 0x369   :  { %v832_v7 = vmul.f32 %v831_v12, %v809_v1  ;;  %v819_v23 = vmul.f32 %v1456_v36, %v818_v10 }
 0x36b   :  { %v833_v57 = vadd.f32 %v832_v7, %v2939_v8  ;;  %v820_v28 = vadd.f32 %v1456_v36, %v819_v23 }
 0x36d   :  { %1457 = vtanh.f32 %v833_v57  ;;  %v824_v27 = vsel %vm823_vm15, %v1456_v36, %v820_v28  ;;  %v2942_v28 = vld [vmem:[#allocation23_spill] sm:$0xff] }
 0x36e   :  { %v829_v35 = vsel %vm826_vm0, %v828_v38, %v824_v27 }
 0x373   :  { %v1458_v30 = vpop.eup %1457 }
 0x374   :  { %v835_v33 = vsub.f32 %v2457_v39, %v1458_v30 }
 0x376   :  { %v836_v4 = vmul.f32 %v835_v33, %v829_v35 }
 0x378   :  { %v2630_v37 = vadd.f32 %v1458_v30, %v836_v4 }
 0x37a   :  { %862 = vmatmul.f32.vlgmr.msrb.gmra.mxu0 %v2630_v37  ;;  %882 = vmatmul.f32.vlgmr.msrb.gmra.mxu1 %v2630_v37 }
 0x37b   :  { %902 = vmatmul.f32.vlgmr.msrb.gmra.mxu2 %v2630_v37  ;;  %1116 = vmatpush.msrb.mxu0 %v2465_v44 }
 0x37c   :  { %1191 = vmatpush.msrb.mxu1 %v2343_v6  ;;  %1211 = vmatpush.msrb.mxu2 %v2472_v47  ;;  %v2670_v6 = vld [vmem:[%s2876_s5 + $0xa0] sm:$0xff] }
 0x37d   :  { %1117 = vmatpush.msrb.mxu0 %v2478_v17  ;;  %v2940_v47 = vld [vmem:[#allocation21_spill] sm:$0xff] }
 0x37e   :  { %1192 = vmatpush.msrb.mxu1 %v2351_v41  ;;  %1212 = vmatpush.msrb.mxu2 %v2485_v61  ;;  %v2678_v41 = vld [vmem:[%s2876_s5 + $0x88] sm:$0xff] }
 0x37f   :  { %1118 = vmatpush.msrb.mxu0 %v2491_v53 }
 0x380   :  { %1193 = vmatpush.msrb.mxu1 %v2359_v16  ;;  %1213 = vmatpush.msrb.mxu2 %v2498_v31  ;;  %v2686_v16 = vld [vmem:[%s2876_s5 + $0x70] sm:$0xff]  ;;  %v2941_v31 = vld [vmem:[#allocation22_spill] sm:$0xff] }
 0x381   :  { %1119 = vmatpush.msrb.mxu0 %v2504_v59 }
 0x382   :  { %1194 = vmatpush.msrb.mxu1 %v2367_v9  ;;  %1214 = vmatpush.msrb.mxu2 %v2511_v32  ;;  %v2694_v9 = vld [vmem:[%s2876_s5 + $0x58] sm:$0xff] }
 0x383   :  { %1120 = vmatpush.msrb.mxu0 %v2517_v62 }
 0x384   :  { %1195 = vmatpush.msrb.mxu1 %v2375_v14  ;;  %1215 = vmatpush.msrb.mxu2 %v2524_v46  ;;  %v1540_v14 = vld [vmem:[%s2876_s5 + $0x50] sm:$0xff] }
 0x385   :  { %1121 = vmatpush.msrb.mxu0 %v2530_v52 }
 0x386   :  { %1196 = vmatpush.msrb.mxu1 %v2383_v15  ;;  %1216 = vmatpush.msrb.mxu2 %v2537_v56  ;;  %v2704_v15 = vld [vmem:[%s2876_s5 + $0x40] sm:$0xff] }
 0x387   :  { %1122 = vmatpush.msrb.mxu0 %v2543_v60 }
 0x388   :  { %1197 = vmatpush.msrb.mxu1 %v2391_v18  ;;  %1217 = vmatpush.msrb.mxu2 %v2550_v0  ;;  %v1542_v18 = vld [vmem:[%s2876_s5 + $0x38] sm:$0xff] }
 0x389   :  { %1123 = vmatpush.msrb.mxu0 %v2556_v25 }
 0x38a   :  { %1198 = vmatpush.msrb.mxu1 %v2399_v19  ;;  %1218 = vmatpush.msrb.mxu2 %v2563_v11  ;;  %v2714_v19 = vld [vmem:[%s2876_s5 + $0x28] sm:$0xff] }
 0x38b   :  { %1124 = vmatpush.msrb.mxu0 %v2662_v42 }
 0x38c   :  { %1199 = vmatpush.msrb.mxu1 %v2407_v20  ;;  %1219 = vmatpush.msrb.mxu2 %v2571_v50  ;;  %v1544_v20 = vld [vmem:[%s2876_s5 + $0x20] sm:$0xff] }
 0x38d   :  { %1125 = vmatpush.msrb.mxu0 %v2670_v6 }
 0x38e   :  { %1200 = vmatpush.msrb.mxu1 %v2415_v21  ;;  %1220 = vmatpush.msrb.mxu2 %v2579_v2  ;;  %v2724_v21 = vld [vmem:[%s2876_s5 + $0x10] sm:$0xff] }
 0x38f   :  { %1126 = vmatpush.msrb.mxu0 %v2678_v41 }
 0x390   :  { %1201 = vmatpush.msrb.mxu1 %v2423_v22  ;;  %1221 = vmatpush.msrb.mxu2 %v2587_v45  ;;  %v1546_v22 = vld [vmem:[%s2876_s5 + $0x8] sm:$0xff] }
 0x391   :  { %1127 = vmatpush.msrb.mxu0 %v2686_v16 }
 0x392   :  { %1202 = vmatpush.msrb.mxu1 %v2431_v24  ;;  %1222 = vmatpush.msrb.mxu2 %v2595_v48 }
 0x393   :  { %1128 = vmatpush.msrb.mxu0 %v2694_v9 }
 0x394   :  { %1203 = vmatpush.msrb.mxu1 %v2439_v26  ;;  %1223 = vmatpush.msrb.mxu2 %v1540_v14 }
 0x395   :  { %1129 = vmatpush.msrb.mxu0 %v2704_v15 }
 0x396   :  { %1204 = vmatpush.msrb.mxu1 %v2605_v55  ;;  %1224 = vmatpush.msrb.mxu2 %v1542_v18 }
 0x397   :  { %1130 = vmatpush.msrb.mxu0 %v2714_v19 }
 0x398   :  { %1205 = vmatpush.msrb.mxu1 %v2613_v58  ;;  %1225 = vmatpush.msrb.mxu2 %v1544_v20 }
 0x399   :  { %1131 = vmatpush.msrb.mxu0 %v2724_v21 }
 0x39a   :  { %1206 = vmatpush.msrb.mxu1 %v2621_v54  ;;  %1226 = vmatpush.msrb.mxu2 %v1546_v22  ;;  %v1316_v22 = vld [vmem:[%s2880_s7 + $0x38] sm:$0xff] }
 0x3f7   :  { %v863_v24 = vpop.f32.mrf.mxu0  ;;  %v883_v26 = vpop.f32.mrf.mxu1 }
 0x3f8   :  { %v906_v61 = vadd.f32 %v863_v24, %v2940_v47  ;;  %v926_v32 = vadd.f32 %v883_v26, %v2941_v31  ;;  %v1315_v26 = vld [vmem:[%s2880_s7 + $0x30] sm:$0xff]  ;;  %v1314_v31 = vld [vmem:[%s2880_s7 + $0x28] sm:$0xff] }
 0x3fa   :  { %v1405_v46 = vmul.f32 -1.442695, %v906_v61  ;;  %v1406_v56 = vmul.f32 -1.442695, %v926_v32 }
 0x3fc   :  { %1459 = vpow2.f32 %v1405_v46  ;;  %v1313_v46 = vld [vmem:[%s2880_s7 + $0x20] sm:$0xff] }
 0x3fd   :  { %1461 = vpow2.f32 %v1406_v56  ;;  %v1312_v56 = vld [vmem:[%s2880_s7 + $0x18] sm:$0xff] }
 0x3fe   :  { %v903_v5 = vpop.f32.mrf.mxu2 }
 0x3ff   :  { %v946_v7 = vadd.f32 %v2269_v51, %v903_v5 }
 0x402   :  { %v1460_v0 = vpop.eup %1459 }
 0x403   :  { %v1462_v11 = vpop.eup %1461  ;;  %v910_v50 = vadd.f32 1.0, %v1460_v0  ;;  %v1311_v0 = vld [vmem:[%s2880_s7 + $0x10] sm:$0xff] }
 0x404   :  { %v930_v2 = vadd.f32 1.0, %v1462_v11  ;;  %v1310_v11 = vld [vmem:[%s2880_s7 + $0x8] sm:$0xff] }
 0x405   :  { %1463 = vrcp.f32 %v910_v50  ;;  %v922_v40 = vand.u32 2147483648, %v910_v50  ;;  %v920_v3 = vand.u32 2147483647, %v910_v50  ;;  %vm916_vm2 = vweird.f32 %v910_v50 }
 0x406   :  { %1465 = vrcp.f32 %v930_v2  ;;  %v942_v30 = vand.u32 2147483648, %v930_v2  ;;  %vm936_vm6 = vweird.f32 %v930_v2  ;;  %v940_v38 = vand.u32 2147483647, %v930_v2 }
 0x407   :  { %v923_v12 = vor.u32 1.1754944e-38, %v922_v40  ;;  %vm921_vm4 = vcmp.eq.f32.partialorder %v920_v3, 8.507059e+37 }
 0x408   :  { %v943_v4 = vor.u32 1.1754944e-38, %v942_v30  ;;  %vm941_vm8 = vcmp.eq.f32.partialorder %v940_v38, 8.507059e+37 }
 0x40b   :  { %v1464_v45 = vpop.eup %1463 }
 0x40c   :  { %v1466_v48 = vpop.eup %1465  ;;  %v912_v55 = vmul.f32 %v1464_v45, %v910_v50  ;;  %vm917_vm1 = vweird.f32 %v1464_v45 }
 0x40d   :  { %v932_v54 = vmul.f32 %v1466_v48, %v930_v2  ;;  %vm918_vm3 = vmor %vm916_vm2, %vm917_vm1  ;;  %vm937_vm5 = vweird.f32 %v1466_v48 }
 0x40e   :  { %v913_v58 = vsub.f32 1.0, %v912_v55  ;;  %vm938_vm7 = vmor %vm936_vm6, %vm937_vm5 }
 0x40f   :  { %v933_v13 = vsub.f32 1.0, %v932_v54 }
 0x410   :  { %v914_v36 = vmul.f32 %v1464_v45, %v913_v58 }
 0x411   :  { %v934_v57 = vmul.f32 %v1466_v48, %v933_v13 }
 0x412   :  { %v915_v10 = vadd.f32 %v1464_v45, %v914_v36 }
 0x413   :  { %v935_v27 = vadd.f32 %v1466_v48, %v934_v57 }
 0x414   :  { %v919_v1 = vsel %vm918_vm3, %v1464_v45, %v915_v10 }
 0x415   :  { %v924_v23 = vsel %vm921_vm4, %v923_v12, %v919_v1  ;;  %v939_v33 = vsel %vm938_vm7, %v1466_v48, %v935_v27  ;;  %v1309_v48 = vld [vmem:[%s2880_s7] sm:$0xff] }
 0x416   :  { %v947_v8 = vmul.f32 %v946_v7, %v924_v23  ;;  %v944_v18 = vsel %vm941_vm8, %v943_v4, %v939_v33  ;;  %v2810_v12 = vld [vmem:[%s2878_s6] ss:$0 sm:$0xff] }
 0x418   :  { %v948_v29 = vadd.f32 %v947_v8, %v2942_v28  ;;  %v2945_v28 = vld [vmem:[#allocation26_spill] sm:$0xff] }
 0x41a   :  { %1467 = vtanh.f32 %v948_v29 }
 0x420   :  { %v1468_v35 = vpop.eup %1467 }
 0x421   :  { %v950_v14 = vsub.f32 %v2630_v37, %v1468_v35 }
 0x423   :  { %v951_v51 = vmul.f32 %v950_v14, %v944_v18 }
 0x425   :  { %v2736_v20 = vadd.f32 %v1468_v35, %v951_v51 }
 0x427   :  { %977 = vmatmul.f32.vlgmr.msra.gmra.mxu3 %v2736_v20  ;;  %997 = vmatmul.f32.vlgmr.msra.gmra.mxu0 %v2736_v20 }
 0x428   :  { %1017 = vmatmul.f32.vlgmr.msra.gmra.mxu1 %v2736_v20  ;;  %1231 = vmatpush.msra.mxu3 %v2465_v44  ;;  %v1324_v44 = vld [vmem:[%s2880_s7 + $0x78] sm:$0xff] }
 0x429   :  { %1329 = vmatpush.msra.mxu0 %v1324_v44 }
 0x42a   :  { %1232 = vmatpush.msra.mxu3 %v2478_v17 }
 0x42c   :  { %1233 = vmatpush.msra.mxu3 %v2491_v53  ;;  %v2943_v53 = vld [vmem:[#allocation25_spill] sm:$0xff] }
 0x42e   :  { %1234 = vmatpush.msra.mxu3 %v2504_v59 }
 0x430   :  { %1235 = vmatpush.msra.mxu3 %v2517_v62  ;;  %v1323_v62 = vld [vmem:[%s2880_s7 + $0x70] sm:$0xff] }
 0x431   :  { %1330 = vmatpush.msra.mxu0 %v1323_v62  ;;  %v2829_v62 = vld [vmem:[%s2881_s8] ss:$0 sm:$0xff] }
 0x432   :  { %1236 = vmatpush.msra.mxu3 %v2530_v52  ;;  %v1322_v52 = vld [vmem:[%s2880_s7 + $0x68] sm:$0xff] }
 0x433   :  { %1331 = vmatpush.msra.mxu0 %v1322_v52  ;;  %v2946_v52 = vld [vmem:[#allocation27_spill] sm:$0xff] }
 0x434   :  { %1237 = vmatpush.msra.mxu3 %v2543_v60 }
 0x436   :  { %1238 = vmatpush.msra.mxu3 %v2556_v25  ;;  %v1321_v25 = vld [vmem:[%s2880_s7 + $0x60] sm:$0xff] }
 0x437   :  { %1332 = vmatpush.msra.mxu0 %v1321_v25 }
 0x438   :  { %1239 = vmatpush.msra.mxu3 %v2662_v42  ;;  %v1320_v42 = vld [vmem:[%s2880_s7 + $0x58] sm:$0xff] }
 0x439   :  { %1333 = vmatpush.msra.mxu0 %v1320_v42 }
 0x43a   :  { %1240 = vmatpush.msra.mxu3 %v2670_v6 }
 0x43c   :  { %1241 = vmatpush.msra.mxu3 %v2678_v41  ;;  %v2944_v41 = vld [vmem:[#allocation24_spill] sm:$0xff] }
 0x43e   :  { %1242 = vmatpush.msra.mxu3 %v2686_v16 }
 0x440   :  { %1243 = vmatpush.msra.mxu3 %v2694_v9  ;;  %v1319_v9 = vld [vmem:[%s2880_s7 + $0x50] sm:$0xff] }
 0x441   :  { %1334 = vmatpush.msra.mxu0 %v1319_v9 }
 0x442   :  { %1244 = vmatpush.msra.mxu3 %v2704_v15 }
 0x444   :  { %1245 = vmatpush.msra.mxu3 %v2714_v19  ;;  %v1318_v19 = vld [vmem:[%s2880_s7 + $0x48] sm:$0xff] }
 0x445   :  { %1335 = vmatpush.msra.mxu0 %v1318_v19 }
 0x446   :  { %1246 = vmatpush.msra.mxu3 %v2724_v21  ;;  %v1317_v21 = vld [vmem:[%s2880_s7 + $0x40] sm:$0xff] }
 0x447   :  { %1336 = vmatpush.msra.mxu0 %v1317_v21 }
 0x449   :  { %1337 = vmatpush.msra.mxu0 %v1316_v22 }
 0x44b   :  { %1338 = vmatpush.msra.mxu0 %v1315_v26 }
 0x44d   :  { %1339 = vmatpush.msra.mxu0 %v1314_v31 }
 0x44f   :  { %1340 = vmatpush.msra.mxu0 %v1313_v46 }
 0x451   :  { %1341 = vmatpush.msra.mxu0 %v1312_v56 }
 0x453   :  { %1342 = vmatpush.msra.mxu0 %v1311_v0 }
 0x455   :  { %1343 = vmatpush.msra.mxu0 %v1310_v11 }
 0x457   :  { %1344 = vmatpush.msra.mxu0 %v1309_v48 }
 0x4a4   :  { %v998_v17 = vpop.f32.mrf.mxu0 }
 0x4a5   :  { %v1041_v59 = vadd.f32 %v998_v17, %v2943_v53  ;;  %v1018_v3 = vpop.f32.mrf.mxu1 }
 0x4a6   :  { %v1061_v1 = vadd.f32 %v2810_v12, %v1018_v3 }
 0x4a7   :  { %v1408_v60 = vmul.f32 -1.442695, %v1041_v59 }
 0x4a9   :  { %1469 = vpow2.f32 %v1408_v60 }
 0x4aa   :  { %v978_v6 = vpop.f32.mrf.mxu3 }
 0x4ab   :  { %v1021_v16 = vadd.f32 %v978_v6, %v2944_v41 }
 0x4ad   :  { %v1407_v15 = vmul.f32 -1.442695, %v1021_v16 }
 0x4af   :  { %1471 = vpow2.f32 %v1407_v15  ;;  %v1470_v24 = vpop.eup %1469 }
 0x4b0   :  { %v1045_v61 = vadd.f32 1.0, %v1470_v24 }
 0x4b2   :  { %v1057_v30 = vand.u32 2147483648, %v1045_v61  ;;  %vm1051_vm14 = vweird.f32 %v1045_v61  ;;  %v1055_v38 = vand.u32 2147483647, %v1045_v61 }
 0x4b4   :  { %v1058_v4 = vor.u32 1.1754944e-38, %v1057_v30  ;;  %vm1056_vm0 = vcmp.eq.f32.partialorder %v1055_v38, 8.507059e+37  ;;  %v2948_v38 = vld [vmem:[#allocation29_spill] sm:$0xff] }
 0x4b5   :  { %v1472_v47 = vpop.eup %1471 }
 0x4b6   :  { %v1025_v32 = vadd.f32 1.0, %v1472_v47 }
 0x4b8   :  { %1473 = vrcp.f32 %v1025_v32  ;;  %v1037_v54 = vand.u32 2147483648, %v1025_v32  ;;  %v1035_v36 = vand.u32 2147483647, %v1025_v32  ;;  %vm1031_vm10 = vweird.f32 %v1025_v32 }
 0x4b9   :  { %1475 = vrcp.f32 %v1045_v61 }
 0x4ba   :  { %v1038_v13 = vor.u32 1.1754944e-38, %v1037_v54  ;;  %vm1036_vm12 = vcmp.eq.f32.partialorder %v1035_v36, 8.507059e+37 }
 0x4be   :  { %v1474_v50 = vpop.eup %1473 }
 0x4bf   :  { %v1476_v2 = vpop.eup %1475  ;;  %v1027_v45 = vmul.f32 %v1474_v50, %v1025_v32  ;;  %vm1032_vm9 = vweird.f32 %v1474_v50 }
 0x4c0   :  { %v1047_v58 = vmul.f32 %v1476_v2, %v1045_v61  ;;  %vm1033_vm11 = vmor %vm1031_vm10, %vm1032_vm9  ;;  %vm1052_vm13 = vweird.f32 %v1476_v2 }
 0x4c1   :  { %v1028_v55 = vsub.f32 1.0, %v1027_v45  ;;  %vm1053_vm15 = vmor %vm1051_vm14, %vm1052_vm13 }
 0x4c2   :  { %v1048_v10 = vsub.f32 1.0, %v1047_v58  ;;  %v2947_v58 = vld [vmem:[#allocation28_spill] sm:$0xff] }
 0x4c3   :  { %v1029_v40 = vmul.f32 %v1474_v50, %v1028_v55 }
 0x4c4   :  { %v1049_v57 = vmul.f32 %v1476_v2, %v1048_v10 }
 0x4c5   :  { %v1030_v5 = vadd.f32 %v1474_v50, %v1029_v40 }
 0x4c6   :  { %v1050_v27 = vadd.f32 %v1476_v2, %v1049_v57 }
 0x4c7   :  { %v1034_v7 = vsel %vm1033_vm11, %v1474_v50, %v1030_v5 }
 0x4c8   :  { %v1039_v23 = vsel %vm1036_vm12, %v1038_v13, %v1034_v7  ;;  %v1054_v33 = vsel %vm1053_vm15, %v1476_v2, %v1050_v27 }
 0x4c9   :  { %v1062_v8 = vmul.f32 %v1061_v1, %v1039_v23  ;;  %v1059_v18 = vsel %vm1056_vm0, %v1058_v4, %v1054_v33 }
 0x4cb   :  { %v1063_v29 = vadd.f32 %v1062_v8, %v2945_v28 }
 0x4cd   :  { %1477 = vtanh.f32 %v1063_v29 }
 0x4d3   :  { %v1478_v35 = vpop.eup %1477 }
 0x4d4   :  { %v1065_v14 = vsub.f32 %v2736_v20, %v1478_v35 }
 0x4d6   :  { %v1066_v51 = vmul.f32 %v1065_v14, %v1059_v18 }
 0x4d8   :  { %v2815_v44 = vadd.f32 %v1478_v35, %v1066_v51  ;;  %v2949_v51 = vld [vmem:[#allocation30_spill] sm:$0xff] }
 0x4da   :  { %1092 = vmatmul.f32.vlgmr.msra.gmra.mxu2 %v2815_v44  ;;  %1112 = vmatmul.f32.vlgmr.msrb.gmra.mxu3 %v2815_v44 }
 0x4db   :  { %1132 = vmatmul.f32.vlgmr.msrb.gmra.mxu0 %v2815_v44 }
 0x4e3   :  { %1345 = vmatmul.f32.vlgmr.msra.gmra.mxu0 %v2274_v49 }
 0x4eb   :  { %1348 = vmatmul.f32.gmra.mxu0 %v2334_v63 }
 0x4f3   :  { %1351 = vmatmul.f32.gmra.mxu0 %v2457_v39 }
 0x4fb   :  { %1354 = vmatmul.f32.gmra.mxu0 %v2630_v37 }
 0x503   :  { %1357 = vmatmul.f32.gmra.mxu0 %v2736_v20 }
 0x50b   :  { %1360 = vmatmul.f32.gmra.mxu0 %v2815_v44 }
 0x558   :  { %v1133_v17 = vpop.f32.mrf.mxu0 }
 0x559   :  { %v1176_v50 = vadd.f32 %v2810_v12, %v1133_v17 }
 0x55d   :  { %v1093_v53 = vpop.f32.mrf.mxu2  ;;  %v1113_v59 = vpop.f32.mrf.mxu3 }
 0x55e   :  { %v1136_v49 = vadd.f32 %v1093_v53, %v2946_v52  ;;  %v1156_v63 = vadd.f32 %v1113_v59, %v2257_v43 }
 0x560   :  { %v1409_v60 = vmul.f32 -1.442695, %v1136_v49  ;;  %v1410_v39 = vmul.f32 -1.442695, %v1156_v63  ;;  %v1346_v25 = vpop.f32.mrf.mxu0 }
 0x561   :  { %v1347_v37 = vadd.f32 %v2829_v62, %v1346_v25 }
 0x562   :  { %1479 = vpow2.f32 %v1409_v60 }
 0x563   :  { %1481 = vpow2.f32 %v1410_v39  ;;  %1370 = vst [vmem:[%s2882_s9] sm:$0xff] %v1347_v37 }
 0x568   :  { %v1480_v20 = vpop.eup %1479  ;;  %v1349_v42 = vpop.f32.mrf.mxu0 }
 0x569   :  { %v1482_v6 = vpop.eup %1481  ;;  %v1140_v41 = vadd.f32 1.0, %v1480_v20  ;;  %v1350_v16 = vadd.f32 %v2829_v62, %v1349_v42 }
 0x56a   :  { %v1160_v9 = vadd.f32 1.0, %v1482_v6 }
 0x56b   :  { %1483 = vrcp.f32 %v1140_v41  ;;  %1371 = vst [vmem:[%s2882_s9 + $0x8] sm:$0xff] %v1350_v16  ;;  %v1152_v26 = vand.u32 2147483648, %v1140_v41  ;;  %v1150_v31 = vand.u32 2147483647, %v1140_v41  ;;  %vm1146_vm2 = vweird.f32 %v1140_v41 }
 0x56c   :  { %1485 = vrcp.f32 %v1160_v9  ;;  %v1172_v5 = vand.u32 2147483648, %v1160_v9  ;;  %vm1166_vm6 = vweird.f32 %v1160_v9  ;;  %v1170_v10 = vand.u32 2147483647, %v1160_v9 }
 0x56d   :  { %v1153_v56 = vor.u32 1.1754944e-38, %v1152_v26  ;;  %vm1151_vm4 = vcmp.eq.f32.partialorder %v1150_v31, 8.507059e+37 }
 0x56e   :  { %v1173_v7 = vor.u32 1.1754944e-38, %v1172_v5  ;;  %vm1171_vm8 = vcmp.eq.f32.partialorder %v1170_v10, 8.507059e+37 }
 0x570   :  { %v1352_v43 = vpop.f32.mrf.mxu0 }
 0x571   :  { %v1484_v15 = vpop.eup %1483  ;;  %v1353_v19 = vadd.f32 %v2829_v62, %v1352_v43 }
 0x572   :  { %v1486_v21 = vpop.eup %1485  ;;  %v1142_v22 = vmul.f32 %v1484_v15, %v1140_v41  ;;  %vm1147_vm1 = vweird.f32 %v1484_v15 }
 0x573   :  { %1372 = vst [vmem:[%s2882_s9 + $0x10] sm:$0xff] %v1353_v19  ;;  %v1162_v47 = vmul.f32 %v1486_v21, %v1160_v9  ;;  %vm1148_vm3 = vmor %vm1146_vm2, %vm1147_vm1  ;;  %vm1167_vm5 = vweird.f32 %v1486_v21 }
 0x574   :  { %v1143_v24 = vsub.f32 1.0, %v1142_v22  ;;  %vm1168_vm7 = vmor %vm1166_vm6, %vm1167_vm5  ;;  %v2950_v22 = vld [vmem:[#allocation7_spill] sm:$0xff] }
 0x575   :  { %v1163_v0 = vsub.f32 1.0, %v1162_v47 }
 0x576   :  { %v1144_v61 = vmul.f32 %v1484_v15, %v1143_v24  ;;  %v302_v24 = vadd.f32 %v2950_v22, %v2220_v34 }
 0x577   :  { %v1164_v55 = vmul.f32 %v1486_v21, %v1163_v0 }
 0x578   :  { %v1145_v32 = vadd.f32 %v1484_v15, %v1144_v61  ;;  %v1355_v46 = vpop.f32.mrf.mxu0 }
 0x579   :  { %v1356_v11 = vadd.f32 %v2829_v62, %v1355_v46  ;;  %v1165_v36 = vadd.f32 %v1486_v21, %v1164_v55 }
 0x57a   :  { %v1149_v2 = vsel %vm1148_vm3, %v1484_v15, %v1145_v32 }
 0x57b   :  { %v1154_v45 = vsel %vm1151_vm4, %v1153_v56, %v1149_v2  ;;  %1373 = vst [vmem:[%s2882_s9 + $0x18] sm:$0xff] %v1356_v11  ;;  %v1169_v13 = vsel %vm1168_vm7, %v1486_v21, %v1165_v36 }
 0x57c   :  { %v1177_v48 = vmul.f32 %v1176_v50, %v1154_v45  ;;  %v1174_v57 = vsel %vm1171_vm8, %v1173_v7, %v1169_v13 }
 0x57e   :  { %v1178_v54 = vadd.f32 %v1177_v48, %v2947_v58 }
 0x580   :  { %v1358_v40 = vpop.f32.mrf.mxu0  ;;  %1487 = vtanh.f32 %v1178_v54 }
 0x581   :  { %v1359_v3 = vadd.f32 %v2829_v62, %v1358_v40 }
 0x583   :  { %1374 = vst [vmem:[%s2882_s9 + $0x20] sm:$0xff] %v1359_v3 }
 0x586   :  { %v1488_v1 = vpop.eup %1487 }
 0x587   :  { %v1180_v23 = vsub.f32 %v2815_v44, %v1488_v1 }
 0x588   :  { %v1361_v8 = vpop.f32.mrf.mxu0 }
 0x589   :  { %v1362_v28 = vadd.f32 %v2829_v62, %v1361_v8  ;;  %v1181_v29 = vmul.f32 %v1180_v23, %v1174_v57 }
 0x58b   :  { %1375 = vst [vmem:[%s2882_s9 + $0x28] sm:$0xff] %v1362_v28  ;;  %v1182_v27 = vadd.f32 %v1488_v1, %v1181_v29 }
 0x58d   :  { %1207 = vmatmul.f32.vlgmr.msrb.gmra.mxu1 %v1182_v27  ;;  %1227 = vmatmul.f32.vlgmr.msrb.gmra.mxu2 %v1182_v27 }
 0x58e   :  { %1247 = vmatmul.f32.vlgmr.msra.gmra.mxu3 %v1182_v27  ;;  %1363 = vmatmul.f32.gmra.mxu0 %v1182_v27 }
 0x60a   :  { %v1208_v30 = vpop.f32.mrf.mxu1 }
 0x60b   :  { %v1251_v33 = vadd.f32 %v1208_v30, %v2948_v38  ;;  %v1364_v35 = vpop.f32.mrf.mxu0 }
 0x60c   :  { %v1365_v4 = vadd.f32 %v2829_v62, %v1364_v35 }
 0x60d   :  { %v1411_v14 = vmul.f32 -1.442695, %v1251_v33 }
 0x60e   :  { %1376 = vst [vmem:[%s2882_s9 + $0x30] sm:$0xff] %v1365_v4 }
 0x60f   :  { %1489 = vpow2.f32 %v1411_v14 }
 0x610   :  { %v1228_v18 = vpop.f32.mrf.mxu2 }
 0x611   :  { %v1271_v44 = vadd.f32 %v1228_v18, %v2949_v51  ;;  %v1248_v6 = vpop.f32.mrf.mxu3 }
 0x612   :  { %v1291_v15 = vadd.f32 %v2810_v12, %v1248_v6 }
 0x613   :  { %v1412_v17 = vmul.f32 -1.442695, %v1271_v44 }
 0x615   :  { %v1490_v53 = vpop.eup %1489  ;;  %1491 = vpow2.f32 %v1412_v17 }
 0x616   :  { %v1255_v59 = vadd.f32 1.0, %v1490_v53 }
 0x618   :  { %1493 = vrcp.f32 %v1255_v59  ;;  %v1267_v25 = vand.u32 2147483648, %v1255_v59  ;;  %v1265_v20 = vand.u32 2147483647, %v1255_v59  ;;  %vm1261_vm10 = vweird.f32 %v1255_v59 }
 0x61a   :  { %v1268_v9 = vor.u32 1.1754944e-38, %v1267_v25  ;;  %vm1266_vm12 = vcmp.eq.f32.partialorder %v1265_v20, 8.507059e+37 }
 0x61b   :  { %v1492_v52 = vpop.eup %1491 }
 0x61c   :  { %v1275_v49 = vadd.f32 1.0, %v1492_v52 }
 0x61e   :  { %v1494_v63 = vpop.eup %1493  ;;  %1495 = vrcp.f32 %v1275_v49  ;;  %v1287_v32 = vand.u32 2147483648, %v1275_v49  ;;  %vm1281_vm14 = vweird.f32 %v1275_v49  ;;  %v1285_v46 = vand.u32 2147483647, %v1275_v49 }
 0x61f   :  { %v1257_v60 = vmul.f32 %v1494_v63, %v1255_v59  ;;  %vm1262_vm9 = vweird.f32 %v1494_v63 }
 0x620   :  { %vm1263_vm11 = vmor %vm1261_vm10, %vm1262_vm9  ;;  %v1288_v11 = vor.u32 1.1754944e-38, %v1287_v32  ;;  %vm1286_vm0 = vcmp.eq.f32.partialorder %v1285_v46, 8.507059e+37 }
 0x621   :  { %v1258_v39 = vsub.f32 1.0, %v1257_v60 }
 0x623   :  { %v1259_v37 = vmul.f32 %v1494_v63, %v1258_v39 }
 0x624   :  { %v1496_v42 = vpop.eup %1495 }
 0x625   :  { %v1260_v41 = vadd.f32 %v1494_v63, %v1259_v37  ;;  %v1277_v16 = vmul.f32 %v1496_v42, %v1275_v49  ;;  %vm1282_vm13 = vweird.f32 %v1496_v42 }
 0x626   :  { %vm1283_vm15 = vmor %vm1281_vm14, %vm1282_vm13 }
 0x627   :  { %v1264_v43 = vsel %vm1263_vm11, %v1494_v63, %v1260_v41  ;;  %v1278_v19 = vsub.f32 1.0, %v1277_v16 }
 0x628   :  { %v1269_v21 = vsel %vm1266_vm12, %v1268_v9, %v1264_v43 }
 0x629   :  { %v1292_v26 = vmul.f32 %v1291_v15, %v1269_v21  ;;  %v1279_v47 = vmul.f32 %v1496_v42, %v1278_v19 }
 0x62b   :  { %v1293_v61 = vadd.f32 %v1292_v26, %v302_v24  ;;  %v1280_v31 = vadd.f32 %v1496_v42, %v1279_v47 }
 0x62d   :  { %1497 = vtanh.f32 %v1293_v61  ;;  %v1284_v56 = vsel %vm1283_vm15, %v1496_v42, %v1280_v31 }
 0x62e   :  { %v1289_v50 = vsel %vm1286_vm0, %v1288_v11, %v1284_v56 }
 0x633   :  { %v1498_v0 = vpop.eup %1497 }
 0x634   :  { %v1295_v12 = vsub.f32 %v1182_v27, %v1498_v0 }
 0x636   :  { %v1296_v2 = vmul.f32 %v1295_v12, %v1289_v50 }
 0x638   :  { %v1297_v45 = vadd.f32 %v1498_v0, %v1296_v2 }
 0x63a   :  { %1366 = vmatmul.f32.gmra.mxu0 %v1297_v45 }
 0x6b7   :  { %v1367_v34 = vpop.f32.mrf.mxu0 }
 0x6b8   :  { %v1368_v48 = vadd.f32 %v2829_v62, %v1367_v34 }
 0x6ba   :  { %1377 = vst [vmem:[%s2882_s9 + $0x38] sm:$0xff] %v1368_v48 }

</bundles_post_ra>
